<compile_context>
chip_gen: v7x
topology: tpu7x:2x2x1
jax: 0.10.0
libtpu: 0.0.40
codegen_flags: <defaults>
</compile_context>

<pallas_src>
import functools

import numpy as np
import jax
import jax.numpy as jnp
from jax.experimental import pallas as pl
from jax.experimental.pallas import tpu as pltpu


# --------------------------- fused Pallas kernel ----------------------------


def _lenet_kernel(p1_ref, w1_ref, b1_ref, t2_ref, b2_ref,
                  wf1_ref, bf1_ref, wf2_ref, bf2_ref, wf3_ref, bf3_ref,
                  out_ref, *, block_images):
    """One grid step = `block_images` (TB) images, fully in VMEM.

    Layouts (all built once in prepare_params / _conv1_patches):
      p1:  (4, TB, 12, 384) bf16  conv1 patches per pool-parity; row = ph (pooled
                                  row), lane = pw*32 + (kh*5+kw).
      w1:  (384, 128) bf16        block-diagonal conv1 weight:
                                  [pw*32+tap, pw*8+c] = conv1.w[c, tap].
      t2:  (5, 128, 128) bf16     conv2 block-Toeplitz weight per kernel row i:
                                  [pw*8+c, ow*16+co] = conv2.w[co, c, i, pw-ow].
      wf1: (512, 128) bf16        fc1 with the pooled/NCHW-flatten layout folded in.
      wf2/wf3: (128,128) f32      pre-transposed, zero-padded fc weights.
      out: (1, TB, 128) f32       padded logits (10 live lanes).
    """
    f32 = jnp.float32
    bf16 = jnp.bfloat16

    # Hoisted loads / broadcasts (used by every image in the block).
    w1 = w1_ref[...]            # (384, 128)
    b1 = b1_ref[...]            # (1, 128)
    b2 = b2_ref[...]            # (1, 128)
    zero16 = jnp.zeros((8, 16), f32)

    pm_rows = []
    for bi in range(block_images):
        # ---- conv1 (+bias+ReLU) fused with the 2x2 max-pool via the 4 parities.
        m = jnp.dot(p1_ref[0, bi], w1, preferred_element_type=f32)       # (12,128)
        for par in range(1, 4):
            m = jnp.maximum(m, jnp.dot(p1_ref[par, bi], w1,
                                       preferred_element_type=f32))
        # max over the pool window commutes with (+per-channel bias, ReLU).
        a1 = jnp.maximum(m + b1, 0.0).astype(bf16)    # (12,128): row=ph, lane=pw*8+c

        # ---- conv2: 5 block-Toeplitz matmuls, one per kernel row (no gathers).
        acc = jnp.dot(a1[0:8, :], t2_ref[0], preferred_element_type=f32)
        for i in range(1, 5):
            acc = acc + jnp.dot(a1[i:i + 8, :], t2_ref[i],
                                preferred_element_type=f32)
        c2 = jnp.maximum(acc + b2, 0.0)               # (8,128): row=oh, lane=ow*16+co

        # ---- pool2: column pool = 16-lane shift + max, row pool = sublane maxes
        #      (concatenated into one 512-lane feature row per image).
        shifted = jnp.concatenate([c2[:, 16:], zero16], axis=1)          # (8,128)
        cm = jnp.maximum(c2, shifted)                 # valid at lanes 32*pw + co
        rows = [jnp.maximum(cm[2 * k:2 * k + 1, :], cm[2 * k + 1:2 * k + 2, :])
                for k in range(4)]
        pm_rows.append(jnp.concatenate(rows, axis=1))  # (1,512): ph*128 + 32*pw + co

    # ---- fc tail, batched across the whole image block.
    pm = jnp.concatenate(pm_rows, axis=0).astype(bf16)                   # (TB, 512)
    h1 = jnp.maximum(jnp.dot(pm, wf1_ref[...], preferred_element_type=f32)
                     + bf1_ref[...], 0.0)                                # (TB, 128)
    h2 = jnp.maximum(jnp.dot(h1, wf2_ref[...], preferred_element_type=f32)
                     + bf2_ref[...], 0.0)                                # (TB, 128)
    out_ref[0] = jnp.dot(h2, wf3_ref[...], preferred_element_type=f32) + bf3_ref[...]


# ------------------------- one-time parameter prep ---------------------------


def prepare_params(params):
    """Fold all layout tricks into the weights once (host-side, numpy)."""
    f32 = np.float32
    w1 = np.asarray(params["w1"], f32)       # (6,1,5,5)
    b1 = np.asarray(params["b1"], f32)
    w2 = np.asarray(params["w2"], f32)       # (16,6,5,5)
    b2 = np.asarray(params["b2"], f32)
    wfc1 = np.asarray(params["wfc1"], f32)   # (120,256)
    bfc1 = np.asarray(params["bfc1"], f32)
    wfc2 = np.asarray(params["wfc2"], f32)   # (84,120)
    bfc2 = np.asarray(params["bfc2"], f32)
    wfc3 = np.asarray(params["wfc3"], f32)   # (10,84)
    bfc3 = np.asarray(params["bfc3"], f32)

    # conv1: block-diagonal weight so the matmul directly yields lanes = pw*8+c.
    w1_taps = w1.reshape(6, 25).T            # (25, 6): [tap, c]
    W1 = np.zeros((384, 128), f32)
    b1_row = np.zeros((1, 128), f32)
    for pw in range(12):
        W1[pw * 32:pw * 32 + 25, pw * 8:pw * 8 + 6] = w1_taps
        b1_row[0, pw * 8:pw * 8 + 6] = b1

    # conv2: block-Toeplitz weight per kernel row i.
    T2 = np.zeros((5, 128, 128), f32)
    for i in range(5):
        for ow in range(8):
            for j in range(5):
                pw = ow + j
                T2[i, pw * 8:pw * 8 + 6, ow * 16:ow * 16 + 16] = w2[:, :, i, j].T
    b2_row = np.tile(b2, 8).reshape(1, 128).astype(f32)

    # fc1: rows indexed by the in-kernel pooled layout ph*128 + 32*pw + co,
    # mapped to the PyTorch NCHW flatten index co*16 + ph*4 + pw.
    WF1 = np.zeros((512, 128), f32)
    for ph in range(4):
        for pw in range(4):
            for co in range(16):
                WF1[ph * 128 + 32 * pw + co, :120] = wfc1[:, co * 16 + ph * 4 + pw]
    bf1 = np.zeros((1, 128), f32); bf1[0, :120] = bfc1
    WF2 = np.zeros((128, 128), f32); WF2[:120, :84] = wfc2.T
    bf2 = np.zeros((1, 128), f32); bf2[0, :84] = bfc2
    WF3 = np.zeros((128, 128), f32); WF3[:84, :10] = wfc3.T
    bf3 = np.zeros((1, 128), f32); bf3[0, :10] = bfc3

    bf16 = jnp.bfloat16
    return dict(
        w1=jnp.asarray(W1, bf16), b1=jnp.asarray(b1_row),
        t2=jnp.asarray(T2, bf16), b2=jnp.asarray(b2_row),
        wf1=jnp.asarray(WF1, bf16), bf1=jnp.asarray(bf1),
        wf2=jnp.asarray(WF2), bf2=jnp.asarray(bf2),
        wf3=jnp.asarray(WF3), bf3=jnp.asarray(bf3),
    )


# ----------------------------- forward wrapper --------------------------------


def _conv1_patches(x, n_pad):
    """x: (N,1,28,28) -> (4, n_pad, 12, 384) bf16 conv1 patches, one per 2x2-pool
    parity; lane index = pw*32 + (kh*5+kw)."""
    n = x.shape[0]
    img = x[:, 0]
    if n_pad > n:
        img = jnp.pad(img, ((0, n_pad - n), (0, 0), (0, 0)))
    cols = []
    for ki in range(5):
        for kj in range(5):
            cols.append(img[:, ki:ki + 24, kj:kj + 24])          # (NP,24,24)
    p = jnp.stack(cols, axis=-1)                                  # (NP,24,24,25)
    p = jnp.pad(p, ((0, 0), (0, 0), (0, 0), (0, 7)))              # (NP,24,24,32)
    parts = []
    for di in range(2):
        for dj in range(2):
            q = p[:, di::2, dj::2, :]                             # (NP,12,12,32)
            parts.append(q.reshape(n_pad, 12, 12 * 32))           # (NP,12,384)
    return jnp.stack(parts, axis=0).astype(jnp.bfloat16)          # (4,NP,12,384)


def net_forward(x, prepped, block_images=8):
    n = x.shape[0]
    tb = min(block_images, n)
    nb = -(-n // tb)                    # ceil(n / tb)
    n_pad = nb * tb
    p1 = _conv1_patches(x, n_pad)

    kernel = functools.partial(_lenet_kernel, block_images=tb)
    const = lambda *dims: (lambda b: tuple(0 for _ in dims))
    # Blocked specs land in VMEM by default; weights use a constant block index so
    # they are fetched once and stay resident across the whole (parallel) grid.
    out = pl.pallas_call(
        kernel,
        grid=(nb,),
        in_specs=[
            pl.BlockSpec((4, tb, 12, 384), lambda b: (0, b, 0, 0)),   # patches
            pl.BlockSpec((384, 128), lambda b: (0, 0)),               # w1
            pl.BlockSpec((1, 128), lambda b: (0, 0)),                 # b1
            pl.BlockSpec((5, 128, 128), lambda b: (0, 0, 0)),         # t2
            pl.BlockSpec((1, 128), lambda b: (0, 0)),                 # b2
            pl.BlockSpec((512, 128), lambda b: (0, 0)),               # wf1
            pl.BlockSpec((1, 128), lambda b: (0, 0)),                 # bf1
            pl.BlockSpec((128, 128), lambda b: (0, 0)),               # wf2
            pl.BlockSpec((1, 128), lambda b: (0, 0)),                 # bf2
            pl.BlockSpec((128, 128), lambda b: (0, 0)),               # wf3
            pl.BlockSpec((1, 128), lambda b: (0, 0)),                 # bf3
        ],
        out_specs=pl.BlockSpec((1, tb, 128), lambda b: (b, 0, 0)),
        out_shape=jax.ShapeDtypeStruct((nb, tb, 128), jnp.float32),
        compiler_params=pltpu.CompilerParams(
            dimension_semantics=("parallel",)),
    )(p1, prepped["w1"], prepped["b1"], prepped["t2"], prepped["b2"],
      prepped["wf1"], prepped["bf1"], prepped["wf2"], prepped["bf2"],
      prepped["wf3"], prepped["bf3"])
    return out.reshape(nb * tb, 128)[:n, :10]


# ------------------------------ pure-JAX reference ----------------------------


def reference_forward(x, params):
    hp = jax.lax.Precision.HIGHEST
    y = jax.lax.conv_general_dilated(
        x, params["w1"], (1, 1), "VALID",
        dimension_numbers=("NCHW", "OIHW", "NCHW"), precision=hp)
    y = jax.nn.relu(y + params["b1"][None, :, None, None])
    y = jax.lax.reduce_window(y, -jnp.inf, jax.lax.max, (1, 1, 2, 2), (1, 1, 2, 2), "VALID")
    y = jax.lax.conv_general_dilated(
        y, params["w2"], (1, 1), "VALID",
        dimension_numbers=("NCHW", "OIHW", "NCHW"), precision=hp)
    y = jax.nn.relu(y + params["b2"][None, :, None, None])
    y = jax.lax.reduce_window(y, -jnp.inf, jax.lax.max, (1, 1, 2, 2), (1, 1, 2, 2), "VALID")
    flat = y.reshape(y.shape[0], -1)
    h = jax.nn.relu(jnp.dot(flat, params["wfc1"].T, precision=hp) + params["bfc1"])
    h = jax.nn.relu(jnp.dot(h, params["wfc2"].T, precision=hp) + params["bfc2"])
    return jnp.dot(h, params["wfc3"].T, precision=hp) + params["bfc3"]


# ----------------------------------- main --------------------------------------


if __name__ == "__main__":
    key = jax.random.PRNGKey(0)
    keys = jax.random.split(key, 11)
    # Deterministic synthetic parameters, shapes match the nn.Module __init__
    # (PyTorch conventions: Conv2d weight (OC, IC, KH, KW), Linear weight (out, in)).
    params = {
        "w1": 0.1 * jax.random.normal(keys[0], (6, 1, 5, 5), jnp.float32),
        "b1": 0.1 * jax.random.normal(keys[1], (6,), jnp.float32),
        "w2": 0.1 * jax.random.normal(keys[2], (16, 6, 5, 5), jnp.float32),
        "b2": 0.1 * jax.random.normal(keys[3], (16,), jnp.float32),
        "wfc1": 0.1 * jax.random.normal(keys[4], (120, 256), jnp.float32),
        "bfc1": 0.1 * jax.random.normal(keys[5], (120,), jnp.float32),
        "wfc2": 0.1 * jax.random.normal(keys[6], (84, 120), jnp.float32),
        "bfc2": 0.1 * jax.random.normal(keys[7], (84,), jnp.float32),
        "wfc3": 0.1 * jax.random.normal(keys[8], (10, 84), jnp.float32),
        "bfc3": 0.1 * jax.random.normal(keys[9], (10,), jnp.float32),
    }
    # Spatial size must be 28x28 so the flatten matches fc1's 16*4*4 input.
    x = jax.random.normal(keys[10], (2, 1, 28, 28), jnp.float32)

    prepped = prepare_params(params)             # one-time weight layout folding
    fwd = jax.jit(net_forward)
    out = fwd(x, prepped)
    jax.block_until_ready(out)
    assert out.shape == (2, 10)

    ref = reference_forward(x, params)
    err = float(jnp.max(jnp.abs(out - ref)))
    assert err < 3e-2, f"mismatch vs reference: {err}"
    print("KERNEL_OK")
</pallas_src>

<mosaic_0001>
module attributes {stable_mosaic.version = 11 : i64} {
  func.func @_lenet_kernel(%arg0: i32, %arg1: memref<4x2x12x384xbf16, #tpu.memory_space<vmem>>, %arg2: memref<384x128xbf16, #tpu.memory_space<vmem>>, %arg3: memref<1x128xf32, #tpu.memory_space<vmem>>, %arg4: memref<5x128x128xbf16, #tpu.memory_space<vmem>>, %arg5: memref<1x128xf32, #tpu.memory_space<vmem>>, %arg6: memref<512x128xbf16, #tpu.memory_space<vmem>>, %arg7: memref<1x128xf32, #tpu.memory_space<vmem>>, %arg8: memref<128x128xf32, #tpu.memory_space<vmem>>, %arg9: memref<1x128xf32, #tpu.memory_space<vmem>>, %arg10: memref<128x128xf32, #tpu.memory_space<vmem>>, %arg11: memref<1x128xf32, #tpu.memory_space<vmem>>, %arg12: memref<1x2x128xf32, #tpu.memory_space<vmem>>) attributes {dimension_semantics = [#tpu.dimension_semantics<parallel>], iteration_bounds = array<i64: 1>, scalar_prefetch = 0 : i64, scratch_operands = 0 : i64, tpu.core_type = #tpu.core_type<tc>, window_params = [{transform_indices = @transform_0, window_bounds = array<i64: 4, 2, 12, 384>}, {pipeline_mode = #tpu.pipeline_mode<synchronous>, transform_indices = @transform_1, window_bounds = array<i64: 384, 128>}, {pipeline_mode = #tpu.pipeline_mode<synchronous>, transform_indices = @transform_2, window_bounds = array<i64: 1, 128>}, {pipeline_mode = #tpu.pipeline_mode<synchronous>, transform_indices = @transform_3, window_bounds = array<i64: 5, 128, 128>}, {pipeline_mode = #tpu.pipeline_mode<synchronous>, transform_indices = @transform_4, window_bounds = array<i64: 1, 128>}, {pipeline_mode = #tpu.pipeline_mode<synchronous>, transform_indices = @transform_5, window_bounds = array<i64: 512, 128>}, {pipeline_mode = #tpu.pipeline_mode<synchronous>, transform_indices = @transform_6, window_bounds = array<i64: 1, 128>}, {pipeline_mode = #tpu.pipeline_mode<synchronous>, transform_indices = @transform_7, window_bounds = array<i64: 128, 128>}, {pipeline_mode = #tpu.pipeline_mode<synchronous>, transform_indices = @transform_8, window_bounds = array<i64: 1, 128>}, {pipeline_mode = #tpu.pipeline_mode<synchronous>, transform_indices = @transform_9, window_bounds = array<i64: 128, 128>}, {pipeline_mode = #tpu.pipeline_mode<synchronous>, transform_indices = @transform_10, window_bounds = array<i64: 1, 128>}, {transform_indices = @transform_11, window_bounds = array<i64: 1, 2, 128>}]} {
    %c0 = arith.constant 0 : index
    %c0_0 = arith.constant 0 : index
    %0 = vector.load %arg2[%c0, %c0_0] : memref<384x128xbf16, #tpu.memory_space<vmem>>, vector<384x128xbf16>
    %c0_1 = arith.constant 0 : index
    %c0_2 = arith.constant 0 : index
    %1 = vector.load %arg3[%c0_1, %c0_2] : memref<1x128xf32, #tpu.memory_space<vmem>>, vector<1x128xf32>
    %c0_3 = arith.constant 0 : index
    %c0_4 = arith.constant 0 : index
    %2 = vector.load %arg5[%c0_3, %c0_4] : memref<1x128xf32, #tpu.memory_space<vmem>>, vector<1x128xf32>
    %cst = arith.constant 0.000000e+00 : f32
    %3 = vector.broadcast %cst : f32 to vector<8x16xf32>
    %c0_5 = arith.constant 0 : index
    %c0_6 = arith.constant 0 : index
    %c0_7 = arith.constant 0 : index
    %c0_8 = arith.constant 0 : index
    %4 = vector.load %arg1[%c0_5, %c0_6, %c0_7, %c0_8] : memref<4x2x12x384xbf16, #tpu.memory_space<vmem>>, vector<1x1x12x384xbf16>
    %5 = vector.shape_cast %4 : vector<1x1x12x384xbf16> to vector<12x384xbf16>
    %cst_9 = arith.constant dense<0.000000e+00> : vector<12x128xf32>
    %6 = tpu.matmul %5, %0, %cst_9 {dimension_numbers = #tpu.dot_dimension_numbers<[1], [0], [0], [1], [0, 0, 1, 1], [], []>} : vector<12x384xbf16>, vector<384x128xbf16>, vector<12x128xf32> -> vector<12x128xf32>
    %c1 = arith.constant 1 : index
    %c0_10 = arith.constant 0 : index
    %c0_11 = arith.constant 0 : index
    %c0_12 = arith.constant 0 : index
    %7 = vector.load %arg1[%c1, %c0_10, %c0_11, %c0_12] : memref<4x2x12x384xbf16, #tpu.memory_space<vmem>>, vector<1x1x12x384xbf16>
    %8 = vector.shape_cast %7 : vector<1x1x12x384xbf16> to vector<12x384xbf16>
    %cst_13 = arith.constant dense<0.000000e+00> : vector<12x128xf32>
    %9 = tpu.matmul %8, %0, %cst_13 {dimension_numbers = #tpu.dot_dimension_numbers<[1], [0], [0], [1], [0, 0, 1, 1], [], []>} : vector<12x384xbf16>, vector<384x128xbf16>, vector<12x128xf32> -> vector<12x128xf32>
    %10 = arith.maximumf %6, %9 : vector<12x128xf32>
    %c2 = arith.constant 2 : index
    %c0_14 = arith.constant 0 : index
    %c0_15 = arith.constant 0 : index
    %c0_16 = arith.constant 0 : index
    %11 = vector.load %arg1[%c2, %c0_14, %c0_15, %c0_16] : memref<4x2x12x384xbf16, #tpu.memory_space<vmem>>, vector<1x1x12x384xbf16>
    %12 = vector.shape_cast %11 : vector<1x1x12x384xbf16> to vector<12x384xbf16>
    %cst_17 = arith.constant dense<0.000000e+00> : vector<12x128xf32>
    %13 = tpu.matmul %12, %0, %cst_17 {dimension_numbers = #tpu.dot_dimension_numbers<[1], [0], [0], [1], [0, 0, 1, 1], [], []>} : vector<12x384xbf16>, vector<384x128xbf16>, vector<12x128xf32> -> vector<12x128xf32>
    %14 = arith.maximumf %10, %13 : vector<12x128xf32>
    %c3 = arith.constant 3 : index
    %c0_18 = arith.constant 0 : index
    %c0_19 = arith.constant 0 : index
    %c0_20 = arith.constant 0 : index
    %15 = vector.load %arg1[%c3, %c0_18, %c0_19, %c0_20] : memref<4x2x12x384xbf16, #tpu.memory_space<vmem>>, vector<1x1x12x384xbf16>
    %16 = vector.shape_cast %15 : vector<1x1x12x384xbf16> to vector<12x384xbf16>
    %cst_21 = arith.constant dense<0.000000e+00> : vector<12x128xf32>
    %17 = tpu.matmul %16, %0, %cst_21 {dimension_numbers = #tpu.dot_dimension_numbers<[1], [0], [0], [1], [0, 0, 1, 1], [], []>} : vector<12x384xbf16>, vector<384x128xbf16>, vector<12x128xf32> -> vector<12x128xf32>
    %18 = arith.maximumf %14, %17 : vector<12x128xf32>
    %19 = vector.broadcast %1 : vector<1x128xf32> to vector<12x128xf32>
    %20 = arith.addf %18, %19 : vector<12x128xf32>
    %cst_22 = arith.constant 0.000000e+00 : f32
    %21 = vector.broadcast %cst_22 : f32 to vector<12x128xf32>
    %22 = arith.maximumf %20, %21 : vector<12x128xf32>
    %23 = arith.truncf %22 : vector<12x128xf32> to vector<12x128xbf16>
    %24 = vector.extract_strided_slice %23 {offsets = [0, 0], sizes = [8, 128], strides = [1, 1]} : vector<12x128xbf16> to vector<8x128xbf16>
    %c0_23 = arith.constant 0 : index
    %c0_24 = arith.constant 0 : index
    %c0_25 = arith.constant 0 : index
    %25 = vector.load %arg4[%c0_23, %c0_24, %c0_25] : memref<5x128x128xbf16, #tpu.memory_space<vmem>>, vector<1x128x128xbf16>
    %26 = vector.shape_cast %25 : vector<1x128x128xbf16> to vector<128x128xbf16>
    %cst_26 = arith.constant dense<0.000000e+00> : vector<8x128xf32>
    %27 = tpu.matmul %24, %26, %cst_26 {dimension_numbers = #tpu.dot_dimension_numbers<[1], [0], [0], [1], [0, 0, 1, 1], [], []>} : vector<8x128xbf16>, vector<128x128xbf16>, vector<8x128xf32> -> vector<8x128xf32>
    %28 = vector.extract_strided_slice %23 {offsets = [1, 0], sizes = [8, 128], strides = [1, 1]} : vector<12x128xbf16> to vector<8x128xbf16>
    %c1_27 = arith.constant 1 : index
    %c0_28 = arith.constant 0 : index
    %c0_29 = arith.constant 0 : index
    %29 = vector.load %arg4[%c1_27, %c0_28, %c0_29] : memref<5x128x128xbf16, #tpu.memory_space<vmem>>, vector<1x128x128xbf16>
    %30 = vector.shape_cast %29 : vector<1x128x128xbf16> to vector<128x128xbf16>
    %cst_30 = arith.constant dense<0.000000e+00> : vector<8x128xf32>
    %31 = tpu.matmul %28, %30, %cst_30 {dimension_numbers = #tpu.dot_dimension_numbers<[1], [0], [0], [1], [0, 0, 1, 1], [], []>} : vector<8x128xbf16>, vector<128x128xbf16>, vector<8x128xf32> -> vector<8x128xf32>
    %32 = arith.addf %27, %31 : vector<8x128xf32>
    %33 = vector.extract_strided_slice %23 {offsets = [2, 0], sizes = [8, 128], strides = [1, 1]} : vector<12x128xbf16> to vector<8x128xbf16>
    %c2_31 = arith.constant 2 : index
    %c0_32 = arith.constant 0 : index
    %c0_33 = arith.constant 0 : index
    %34 = vector.load %arg4[%c2_31, %c0_32, %c0_33] : memref<5x128x128xbf16, #tpu.memory_space<vmem>>, vector<1x128x128xbf16>
    %35 = vector.shape_cast %34 : vector<1x128x128xbf16> to vector<128x128xbf16>
    %cst_34 = arith.constant dense<0.000000e+00> : vector<8x128xf32>
    %36 = tpu.matmul %33, %35, %cst_34 {dimension_numbers = #tpu.dot_dimension_numbers<[1], [0], [0], [1], [0, 0, 1, 1], [], []>} : vector<8x128xbf16>, vector<128x128xbf16>, vector<8x128xf32> -> vector<8x128xf32>
    %37 = arith.addf %32, %36 : vector<8x128xf32>
    %38 = vector.extract_strided_slice %23 {offsets = [3, 0], sizes = [8, 128], strides = [1, 1]} : vector<12x128xbf16> to vector<8x128xbf16>
    %c3_35 = arith.constant 3 : index
    %c0_36 = arith.constant 0 : index
    %c0_37 = arith.constant 0 : index
    %39 = vector.load %arg4[%c3_35, %c0_36, %c0_37] : memref<5x128x128xbf16, #tpu.memory_space<vmem>>, vector<1x128x128xbf16>
    %40 = vector.shape_cast %39 : vector<1x128x128xbf16> to vector<128x128xbf16>
    %cst_38 = arith.constant dense<0.000000e+00> : vector<8x128xf32>
    %41 = tpu.matmul %38, %40, %cst_38 {dimension_numbers = #tpu.dot_dimension_numbers<[1], [0], [0], [1], [0, 0, 1, 1], [], []>} : vector<8x128xbf16>, vector<128x128xbf16>, vector<8x128xf32> -> vector<8x128xf32>
    %42 = arith.addf %37, %41 : vector<8x128xf32>
    %43 = vector.extract_strided_slice %23 {offsets = [4, 0], sizes = [8, 128], strides = [1, 1]} : vector<12x128xbf16> to vector<8x128xbf16>
    %c4 = arith.constant 4 : index
    %c0_39 = arith.constant 0 : index
    %c0_40 = arith.constant 0 : index
    %44 = vector.load %arg4[%c4, %c0_39, %c0_40] : memref<5x128x128xbf16, #tpu.memory_space<vmem>>, vector<1x128x128xbf16>
    %45 = vector.shape_cast %44 : vector<1x128x128xbf16> to vector<128x128xbf16>
    %cst_41 = arith.constant dense<0.000000e+00> : vector<8x128xf32>
    %46 = tpu.matmul %43, %45, %cst_41 {dimension_numbers = #tpu.dot_dimension_numbers<[1], [0], [0], [1], [0, 0, 1, 1], [], []>} : vector<8x128xbf16>, vector<128x128xbf16>, vector<8x128xf32> -> vector<8x128xf32>
    %47 = arith.addf %42, %46 : vector<8x128xf32>
    %48 = vector.broadcast %2 : vector<1x128xf32> to vector<8x128xf32>
    %49 = arith.addf %47, %48 : vector<8x128xf32>
    %cst_42 = arith.constant 0.000000e+00 : f32
    %50 = vector.broadcast %cst_42 : f32 to vector<8x128xf32>
    %51 = arith.maximumf %49, %50 : vector<8x128xf32>
    %52 = vector.extract_strided_slice %51 {offsets = [0, 16], sizes = [8, 112], strides = [1, 1]} : vector<8x128xf32> to vector<8x112xf32>
    %53 = tpu.concatenate %52, %3 in 1 : vector<8x112xf32>, vector<8x16xf32> -> vector<8x128xf32>
    %54 = arith.maximumf %51, %53 : vector<8x128xf32>
    %55 = vector.extract_strided_slice %54 {offsets = [0, 0], sizes = [1, 128], strides = [1, 1]} : vector<8x128xf32> to vector<1x128xf32>
    %56 = vector.extract_strided_slice %54 {offsets = [1, 0], sizes = [1, 128], strides = [1, 1]} : vector<8x128xf32> to vector<1x128xf32>
    %57 = arith.maximumf %55, %56 : vector<1x128xf32>
    %58 = vector.extract_strided_slice %54 {offsets = [2, 0], sizes = [1, 128], strides = [1, 1]} : vector<8x128xf32> to vector<1x128xf32>
    %59 = vector.extract_strided_slice %54 {offsets = [3, 0], sizes = [1, 128], strides = [1, 1]} : vector<8x128xf32> to vector<1x128xf32>
    %60 = arith.maximumf %58, %59 : vector<1x128xf32>
    %61 = vector.extract_strided_slice %54 {offsets = [4, 0], sizes = [1, 128], strides = [1, 1]} : vector<8x128xf32> to vector<1x128xf32>
    %62 = vector.extract_strided_slice %54 {offsets = [5, 0], sizes = [1, 128], strides = [1, 1]} : vector<8x128xf32> to vector<1x128xf32>
    %63 = arith.maximumf %61, %62 : vector<1x128xf32>
    %64 = vector.extract_strided_slice %54 {offsets = [6, 0], sizes = [1, 128], strides = [1, 1]} : vector<8x128xf32> to vector<1x128xf32>
    %65 = vector.extract_strided_slice %54 {offsets = [7, 0], sizes = [1, 128], strides = [1, 1]} : vector<8x128xf32> to vector<1x128xf32>
    %66 = arith.maximumf %64, %65 : vector<1x128xf32>
    %67 = tpu.concatenate %57, %60, %63, %66 in 1 : vector<1x128xf32>, vector<1x128xf32>, vector<1x128xf32>, vector<1x128xf32> -> vector<1x512xf32>
    %c0_43 = arith.constant 0 : index
    %c1_44 = arith.constant 1 : index
    %c0_45 = arith.constant 0 : index
    %c0_46 = arith.constant 0 : index
    %68 = vector.load %arg1[%c0_43, %c1_44, %c0_45, %c0_46] : memref<4x2x12x384xbf16, #tpu.memory_space<vmem>>, vector<1x1x12x384xbf16>
    %69 = vector.shape_cast %68 : vector<1x1x12x384xbf16> to vector<12x384xbf16>
    %cst_47 = arith.constant dense<0.000000e+00> : vector<12x128xf32>
    %70 = tpu.matmul %69, %0, %cst_47 {dimension_numbers = #tpu.dot_dimension_numbers<[1], [0], [0], [1], [0, 0, 1, 1], [], []>} : vector<12x384xbf16>, vector<384x128xbf16>, vector<12x128xf32> -> vector<12x128xf32>
    %c1_48 = arith.constant 1 : index
    %c1_49 = arith.constant 1 : index
    %c0_50 = arith.constant 0 : index
    %c0_51 = arith.constant 0 : index
    %71 = vector.load %arg1[%c1_48, %c1_49, %c0_50, %c0_51] : memref<4x2x12x384xbf16, #tpu.memory_space<vmem>>, vector<1x1x12x384xbf16>
    %72 = vector.shape_cast %71 : vector<1x1x12x384xbf16> to vector<12x384xbf16>
    %cst_52 = arith.constant dense<0.000000e+00> : vector<12x128xf32>
    %73 = tpu.matmul %72, %0, %cst_52 {dimension_numbers = #tpu.dot_dimension_numbers<[1], [0], [0], [1], [0, 0, 1, 1], [], []>} : vector<12x384xbf16>, vector<384x128xbf16>, vector<12x128xf32> -> vector<12x128xf32>
    %74 = arith.maximumf %70, %73 : vector<12x128xf32>
    %c2_53 = arith.constant 2 : index
    %c1_54 = arith.constant 1 : index
    %c0_55 = arith.constant 0 : index
    %c0_56 = arith.constant 0 : index
    %75 = vector.load %arg1[%c2_53, %c1_54, %c0_55, %c0_56] : memref<4x2x12x384xbf16, #tpu.memory_space<vmem>>, vector<1x1x12x384xbf16>
    %76 = vector.shape_cast %75 : vector<1x1x12x384xbf16> to vector<12x384xbf16>
    %cst_57 = arith.constant dense<0.000000e+00> : vector<12x128xf32>
    %77 = tpu.matmul %76, %0, %cst_57 {dimension_numbers = #tpu.dot_dimension_numbers<[1], [0], [0], [1], [0, 0, 1, 1], [], []>} : vector<12x384xbf16>, vector<384x128xbf16>, vector<12x128xf32> -> vector<12x128xf32>
    %78 = arith.maximumf %74, %77 : vector<12x128xf32>
    %c3_58 = arith.constant 3 : index
    %c1_59 = arith.constant 1 : index
    %c0_60 = arith.constant 0 : index
    %c0_61 = arith.constant 0 : index
    %79 = vector.load %arg1[%c3_58, %c1_59, %c0_60, %c0_61] : memref<4x2x12x384xbf16, #tpu.memory_space<vmem>>, vector<1x1x12x384xbf16>
    %80 = vector.shape_cast %79 : vector<1x1x12x384xbf16> to vector<12x384xbf16>
    %cst_62 = arith.constant dense<0.000000e+00> : vector<12x128xf32>
    %81 = tpu.matmul %80, %0, %cst_62 {dimension_numbers = #tpu.dot_dimension_numbers<[1], [0], [0], [1], [0, 0, 1, 1], [], []>} : vector<12x384xbf16>, vector<384x128xbf16>, vector<12x128xf32> -> vector<12x128xf32>
    %82 = arith.maximumf %78, %81 : vector<12x128xf32>
    %83 = vector.broadcast %1 : vector<1x128xf32> to vector<12x128xf32>
    %84 = arith.addf %82, %83 : vector<12x128xf32>
    %cst_63 = arith.constant 0.000000e+00 : f32
    %85 = vector.broadcast %cst_63 : f32 to vector<12x128xf32>
    %86 = arith.maximumf %84, %85 : vector<12x128xf32>
    %87 = arith.truncf %86 : vector<12x128xf32> to vector<12x128xbf16>
    %88 = vector.extract_strided_slice %87 {offsets = [0, 0], sizes = [8, 128], strides = [1, 1]} : vector<12x128xbf16> to vector<8x128xbf16>
    %c0_64 = arith.constant 0 : index
    %c0_65 = arith.constant 0 : index
    %c0_66 = arith.constant 0 : index
    %89 = vector.load %arg4[%c0_64, %c0_65, %c0_66] : memref<5x128x128xbf16, #tpu.memory_space<vmem>>, vector<1x128x128xbf16>
    %90 = vector.shape_cast %89 : vector<1x128x128xbf16> to vector<128x128xbf16>
    %cst_67 = arith.constant dense<0.000000e+00> : vector<8x128xf32>
    %91 = tpu.matmul %88, %90, %cst_67 {dimension_numbers = #tpu.dot_dimension_numbers<[1], [0], [0], [1], [0, 0, 1, 1], [], []>} : vector<8x128xbf16>, vector<128x128xbf16>, vector<8x128xf32> -> vector<8x128xf32>
    %92 = vector.extract_strided_slice %87 {offsets = [1, 0], sizes = [8, 128], strides = [1, 1]} : vector<12x128xbf16> to vector<8x128xbf16>
    %c1_68 = arith.constant 1 : index
    %c0_69 = arith.constant 0 : index
    %c0_70 = arith.constant 0 : index
    %93 = vector.load %arg4[%c1_68, %c0_69, %c0_70] : memref<5x128x128xbf16, #tpu.memory_space<vmem>>, vector<1x128x128xbf16>
    %94 = vector.shape_cast %93 : vector<1x128x128xbf16> to vector<128x128xbf16>
    %cst_71 = arith.constant dense<0.000000e+00> : vector<8x128xf32>
    %95 = tpu.matmul %92, %94, %cst_71 {dimension_numbers = #tpu.dot_dimension_numbers<[1], [0], [0], [1], [0, 0, 1, 1], [], []>} : vector<8x128xbf16>, vector<128x128xbf16>, vector<8x128xf32> -> vector<8x128xf32>
    %96 = arith.addf %91, %95 : vector<8x128xf32>
    %97 = vector.extract_strided_slice %87 {offsets = [2, 0], sizes = [8, 128], strides = [1, 1]} : vector<12x128xbf16> to vector<8x128xbf16>
    %c2_72 = arith.constant 2 : index
    %c0_73 = arith.constant 0 : index
    %c0_74 = arith.constant 0 : index
    %98 = vector.load %arg4[%c2_72, %c0_73, %c0_74] : memref<5x128x128xbf16, #tpu.memory_space<vmem>>, vector<1x128x128xbf16>
    %99 = vector.shape_cast %98 : vector<1x128x128xbf16> to vector<128x128xbf16>
    %cst_75 = arith.constant dense<0.000000e+00> : vector<8x128xf32>
    %100 = tpu.matmul %97, %99, %cst_75 {dimension_numbers = #tpu.dot_dimension_numbers<[1], [0], [0], [1], [0, 0, 1, 1], [], []>} : vector<8x128xbf16>, vector<128x128xbf16>, vector<8x128xf32> -> vector<8x128xf32>
    %101 = arith.addf %96, %100 : vector<8x128xf32>
    %102 = vector.extract_strided_slice %87 {offsets = [3, 0], sizes = [8, 128], strides = [1, 1]} : vector<12x128xbf16> to vector<8x128xbf16>
    %c3_76 = arith.constant 3 : index
    %c0_77 = arith.constant 0 : index
    %c0_78 = arith.constant 0 : index
    %103 = vector.load %arg4[%c3_76, %c0_77, %c0_78] : memref<5x128x128xbf16, #tpu.memory_space<vmem>>, vector<1x128x128xbf16>
    %104 = vector.shape_cast %103 : vector<1x128x128xbf16> to vector<128x128xbf16>
    %cst_79 = arith.constant dense<0.000000e+00> : vector<8x128xf32>
    %105 = tpu.matmul %102, %104, %cst_79 {dimension_numbers = #tpu.dot_dimension_numbers<[1], [0], [0], [1], [0, 0, 1, 1], [], []>} : vector<8x128xbf16>, vector<128x128xbf16>, vector<8x128xf32> -> vector<8x128xf32>
    %106 = arith.addf %101, %105 : vector<8x128xf32>
    %107 = vector.extract_strided_slice %87 {offsets = [4, 0], sizes = [8, 128], strides = [1, 1]} : vector<12x128xbf16> to vector<8x128xbf16>
    %c4_80 = arith.constant 4 : index
    %c0_81 = arith.constant 0 : index
    %c0_82 = arith.constant 0 : index
    %108 = vector.load %arg4[%c4_80, %c0_81, %c0_82] : memref<5x128x128xbf16, #tpu.memory_space<vmem>>, vector<1x128x128xbf16>
    %109 = vector.shape_cast %108 : vector<1x128x128xbf16> to vector<128x128xbf16>
    %cst_83 = arith.constant dense<0.000000e+00> : vector<8x128xf32>
    %110 = tpu.matmul %107, %109, %cst_83 {dimension_numbers = #tpu.dot_dimension_numbers<[1], [0], [0], [1], [0, 0, 1, 1], [], []>} : vector<8x128xbf16>, vector<128x128xbf16>, vector<8x128xf32> -> vector<8x128xf32>
    %111 = arith.addf %106, %110 : vector<8x128xf32>
    %112 = vector.broadcast %2 : vector<1x128xf32> to vector<8x128xf32>
    %113 = arith.addf %111, %112 : vector<8x128xf32>
    %cst_84 = arith.constant 0.000000e+00 : f32
    %114 = vector.broadcast %cst_84 : f32 to vector<8x128xf32>
    %115 = arith.maximumf %113, %114 : vector<8x128xf32>
    %116 = vector.extract_strided_slice %115 {offsets = [0, 16], sizes = [8, 112], strides = [1, 1]} : vector<8x128xf32> to vector<8x112xf32>
    %117 = tpu.concatenate %116, %3 in 1 : vector<8x112xf32>, vector<8x16xf32> -> vector<8x128xf32>
    %118 = arith.maximumf %115, %117 : vector<8x128xf32>
    %119 = vector.extract_strided_slice %118 {offsets = [0, 0], sizes = [1, 128], strides = [1, 1]} : vector<8x128xf32> to vector<1x128xf32>
    %120 = vector.extract_strided_slice %118 {offsets = [1, 0], sizes = [1, 128], strides = [1, 1]} : vector<8x128xf32> to vector<1x128xf32>
    %121 = arith.maximumf %119, %120 : vector<1x128xf32>
    %122 = vector.extract_strided_slice %118 {offsets = [2, 0], sizes = [1, 128], strides = [1, 1]} : vector<8x128xf32> to vector<1x128xf32>
    %123 = vector.extract_strided_slice %118 {offsets = [3, 0], sizes = [1, 128], strides = [1, 1]} : vector<8x128xf32> to vector<1x128xf32>
    %124 = arith.maximumf %122, %123 : vector<1x128xf32>
    %125 = vector.extract_strided_slice %118 {offsets = [4, 0], sizes = [1, 128], strides = [1, 1]} : vector<8x128xf32> to vector<1x128xf32>
    %126 = vector.extract_strided_slice %118 {offsets = [5, 0], sizes = [1, 128], strides = [1, 1]} : vector<8x128xf32> to vector<1x128xf32>
    %127 = arith.maximumf %125, %126 : vector<1x128xf32>
    %128 = vector.extract_strided_slice %118 {offsets = [6, 0], sizes = [1, 128], strides = [1, 1]} : vector<8x128xf32> to vector<1x128xf32>
    %129 = vector.extract_strided_slice %118 {offsets = [7, 0], sizes = [1, 128], strides = [1, 1]} : vector<8x128xf32> to vector<1x128xf32>
    %130 = arith.maximumf %128, %129 : vector<1x128xf32>
    %131 = tpu.concatenate %121, %124, %127, %130 in 1 : vector<1x128xf32>, vector<1x128xf32>, vector<1x128xf32>, vector<1x128xf32> -> vector<1x512xf32>
    %132 = tpu.concatenate %67, %131 in 0 : vector<1x512xf32>, vector<1x512xf32> -> vector<2x512xf32>
    %133 = arith.truncf %132 : vector<2x512xf32> to vector<2x512xbf16>
    %c0_85 = arith.constant 0 : index
    %c0_86 = arith.constant 0 : index
    %134 = vector.load %arg6[%c0_85, %c0_86] : memref<512x128xbf16, #tpu.memory_space<vmem>>, vector<512x128xbf16>
    %cst_87 = arith.constant dense<0.000000e+00> : vector<2x128xf32>
    %135 = tpu.matmul %133, %134, %cst_87 {dimension_numbers = #tpu.dot_dimension_numbers<[1], [0], [0], [1], [0, 0, 1, 1], [], []>} : vector<2x512xbf16>, vector<512x128xbf16>, vector<2x128xf32> -> vector<2x128xf32>
    %c0_88 = arith.constant 0 : index
    %c0_89 = arith.constant 0 : index
    %136 = vector.load %arg7[%c0_88, %c0_89] : memref<1x128xf32, #tpu.memory_space<vmem>>, vector<1x128xf32>
    %137 = vector.broadcast %136 : vector<1x128xf32> to vector<2x128xf32>
    %138 = arith.addf %135, %137 : vector<2x128xf32>
    %cst_90 = arith.constant 0.000000e+00 : f32
    %139 = vector.broadcast %cst_90 : f32 to vector<2x128xf32>
    %140 = arith.maximumf %138, %139 : vector<2x128xf32>
    %c0_91 = arith.constant 0 : index
    %c0_92 = arith.constant 0 : index
    %141 = vector.load %arg8[%c0_91, %c0_92] : memref<128x128xf32, #tpu.memory_space<vmem>>, vector<128x128xf32>
    %cst_93 = arith.constant dense<0.000000e+00> : vector<2x128xf32>
    %142 = tpu.matmul %140, %141, %cst_93 {dimension_numbers = #tpu.dot_dimension_numbers<[1], [0], [0], [1], [0, 0, 1, 1], [], []>} : vector<2x128xf32>, vector<128x128xf32>, vector<2x128xf32> -> vector<2x128xf32>
    %c0_94 = arith.constant 0 : index
    %c0_95 = arith.constant 0 : index
    %143 = vector.load %arg9[%c0_94, %c0_95] : memref<1x128xf32, #tpu.memory_space<vmem>>, vector<1x128xf32>
    %144 = vector.broadcast %143 : vector<1x128xf32> to vector<2x128xf32>
    %145 = arith.addf %142, %144 : vector<2x128xf32>
    %cst_96 = arith.constant 0.000000e+00 : f32
    %146 = vector.broadcast %cst_96 : f32 to vector<2x128xf32>
    %147 = arith.maximumf %145, %146 : vector<2x128xf32>
    %c0_97 = arith.constant 0 : index
    %c0_98 = arith.constant 0 : index
    %148 = vector.load %arg10[%c0_97, %c0_98] : memref<128x128xf32, #tpu.memory_space<vmem>>, vector<128x128xf32>
    %cst_99 = arith.constant dense<0.000000e+00> : vector<2x128xf32>
    %149 = tpu.matmul %147, %148, %cst_99 {dimension_numbers = #tpu.dot_dimension_numbers<[1], [0], [0], [1], [0, 0, 1, 1], [], []>} : vector<2x128xf32>, vector<128x128xf32>, vector<2x128xf32> -> vector<2x128xf32>
    %c0_100 = arith.constant 0 : index
    %c0_101 = arith.constant 0 : index
    %150 = vector.load %arg11[%c0_100, %c0_101] : memref<1x128xf32, #tpu.memory_space<vmem>>, vector<1x128xf32>
    %151 = vector.broadcast %150 : vector<1x128xf32> to vector<2x128xf32>
    %152 = arith.addf %149, %151 : vector<2x128xf32>
    %c0_102 = arith.constant 0 : index
    %c0_103 = arith.constant 0 : index
    %c0_104 = arith.constant 0 : index
    %153 = vector.load %arg12[%c0_102, %c0_103, %c0_104] : memref<1x2x128xf32, #tpu.memory_space<vmem>>, vector<1x2x128xf32>
    %154 = vector.shape_cast %153 : vector<1x2x128xf32> to vector<2x128xf32>
    %155 = vector.shape_cast %152 : vector<2x128xf32> to vector<1x2x128xf32>
    tpu.vector_store %arg12[%c0_102, %c0_103, %c0_104], %155 {strides = array<i32>} : memref<1x2x128xf32, #tpu.memory_space<vmem>>, vector<1x2x128xf32>,
    return
  }
  func.func @transform_0(%arg0: i32) -> (i32, i32, i32, i32) {
    %c0_i32 = arith.constant 0 : i32
    %c0_i32_0 = arith.constant 0 : i32
    %c0_i32_1 = arith.constant 0 : i32
    %c0_i32_2 = arith.constant 0 : i32
    return %c0_i32, %arg0, %c0_i32_0, %c0_i32_1 : i32, i32, i32, i32
  }
  func.func @transform_1(%arg0: i32) -> (i32, i32) {
    %c0_i32 = arith.constant 0 : i32
    %c0_i32_0 = arith.constant 0 : i32
    %c0_i32_1 = arith.constant 0 : i32
    return %c0_i32, %c0_i32_0 : i32, i32
  }
  func.func @transform_2(%arg0: i32) -> (i32, i32) {
    %c0_i32 = arith.constant 0 : i32
    %c0_i32_0 = arith.constant 0 : i32
    %c0_i32_1 = arith.constant 0 : i32
    return %c0_i32, %c0_i32_0 : i32, i32
  }
  func.func @transform_3(%arg0: i32) -> (i32, i32, i32) {
    %c0_i32 = arith.constant 0 : i32
    %c0_i32_0 = arith.constant 0 : i32
    %c0_i32_1 = arith.constant 0 : i32
    %c0_i32_2 = arith.constant 0 : i32
    return %c0_i32, %c0_i32_0, %c0_i32_1 : i32, i32, i32
  }
  func.func @transform_4(%arg0: i32) -> (i32, i32) {
    %c0_i32 = arith.constant 0 : i32
    %c0_i32_0 = arith.constant 0 : i32
    %c0_i32_1 = arith.constant 0 : i32
    return %c0_i32, %c0_i32_0 : i32, i32
  }
  func.func @transform_5(%arg0: i32) -> (i32, i32) {
    %c0_i32 = arith.constant 0 : i32
    %c0_i32_0 = arith.constant 0 : i32
    %c0_i32_1 = arith.constant 0 : i32
    return %c0_i32, %c0_i32_0 : i32, i32
  }
  func.func @transform_6(%arg0: i32) -> (i32, i32) {
    %c0_i32 = arith.constant 0 : i32
    %c0_i32_0 = arith.constant 0 : i32
    %c0_i32_1 = arith.constant 0 : i32
    return %c0_i32, %c0_i32_0 : i32, i32
  }
  func.func @transform_7(%arg0: i32) -> (i32, i32) {
    %c0_i32 = arith.constant 0 : i32
    %c0_i32_0 = arith.constant 0 : i32
    %c0_i32_1 = arith.constant 0 : i32
    return %c0_i32, %c0_i32_0 : i32, i32
  }
  func.func @transform_8(%arg0: i32) -> (i32, i32) {
    %c0_i32 = arith.constant 0 : i32
    %c0_i32_0 = arith.constant 0 : i32
    %c0_i32_1 = arith.constant 0 : i32
    return %c0_i32, %c0_i32_0 : i32, i32
  }
  func.func @transform_9(%arg0: i32) -> (i32, i32) {
    %c0_i32 = arith.constant 0 : i32
    %c0_i32_0 = arith.constant 0 : i32
    %c0_i32_1 = arith.constant 0 : i32
    return %c0_i32, %c0_i32_0 : i32, i32
  }
  func.func @transform_10(%arg0: i32) -> (i32, i32) {
    %c0_i32 = arith.constant 0 : i32
    %c0_i32_0 = arith.constant 0 : i32
    %c0_i32_1 = arith.constant 0 : i32
    return %c0_i32, %c0_i32_0 : i32, i32
  }
  func.func @transform_11(%arg0: i32) -> (i32, i32, i32) {
    %c0_i32 = arith.constant 0 : i32
    %c0_i32_0 = arith.constant 0 : i32
    %c0_i32_1 = arith.constant 0 : i32
    return %arg0, %c0_i32, %c0_i32_0 : i32, i32, i32
  }
}

</mosaic_0001>

<bundles_post_ra>
// kernel: net_forward.1
= control target key start
LH: loop header
LB: loop body
LE: loop exit
PB: predicated region body
PF: predicated region fallthrough
CT: control target
= control target key end

     0   :  { %v5063_v1 = vmov 0.0   ;;  %vm3755_vm0 = vmmov 0   ;;  %s5049_s0 = inlined_call_operand.vmem [shape: bf16[4,2,12,384], index: 0, kind: input, shape index: {}]   ;;  %s5050_s1 = inlined_call_operand.vmem [shape: bf16[384,128], index: 1, kind: input, shape index: {}]   ;;  %s5051_s2 = inlined_call_operand.vmem [shape: f32[1,128], index: 2, kind: input, shape index: {}]   ;;  %s5052_s3 = inlined_call_operand.vmem [shape: bf16[5,128,128], index: 3, kind: input, shape index: {}]   ;;  %s5053_s4 = inlined_call_operand.vmem [shape: f32[1,128], index: 4, kind: input, shape index: {}]   ;;  %s5054_s5 = inlined_call_operand.vmem [shape: bf16[512,128], index: 5, kind: input, shape index: {}]   ;;  %s5055_s6 = inlined_call_operand.vmem [shape: f32[1,128], index: 6, kind: input, shape index: {}]   ;;  %s5056_s7 = inlined_call_operand.vmem [shape: f32[128,128], index: 7, kind: input, shape index: {}]   ;;  %s5057_s8 = inlined_call_operand.vmem [shape: f32[1,128], index: 8, kind: input, shape index: {}]   ;;  %s5058_s9 = inlined_call_operand.vmem [shape: f32[128,128], index: 9, kind: input, shape index: {}]   ;;  %s5059_s10 = inlined_call_operand.vmem [shape: f32[1,128], index: 10, kind: input, shape index: {}]   ;;  %s5060_s11 = inlined_call_operand.hbm [shape: f32[1,2,128], index: 11, kind: output, shape index: {}]  }
   0x1   :  { %v3822_v0 = vld [vmem:[%s5050_s1 + $0x40] sm:$0xff]   ;;  %3090 = vmatprep.subr.bf16.mxu1 %v5063_v1  ;;  %3106 = vmatprep.mubr.msk.bf16.mxu1 %vm3755_vm0, %v5063_v1  ;;  %v3842_v4 = vld [vmem:[%s5050_s1 + $0x48] sm:$0xff]   ;;  %v3860_v7 = vld [vmem:[%s5050_s1 + $0x50] sm:$0xff]  }
   0x2   :  { %v3828_v2 = vld [vmem:[%s5050_s1] sm:$0xff]   ;;  %2674 = vmatprep.subr.bf16.mxu0 %v3822_v0  ;;  %v3848_v5 = vld [vmem:[%s5050_s1 + $0x8] sm:$0xff]   ;;  %v3866_v8 = vld [vmem:[%s5050_s1 + $0x10] sm:$0xff]  }
   0x3   :  { %v3834_v3 = vld [vmem:[%s5050_s1 + $0x80] sm:$0xff]   ;;  %2675 = vmatpush3.bf16.msra.mxu0 %v3828_v2  ;;  %v3855_v6 = vld [vmem:[%s5050_s1 + $0x88] sm:$0xff]   ;;  %v3873_v9 = vld [vmem:[%s5050_s1 + $0x90] sm:$0xff]  }
   0x4   :  { %3091 = vmatpush3.bf16.msra.mxu1 %v3834_v3  ;;  %2676 = vmatprep.subr.bf16.mxu0 %v3842_v4  ;;  %v3879_v10 = vld [vmem:[%s5050_s1 + $0x58] sm:$0xff]   ;;  %v3897_v13 = vld [vmem:[%s5050_s1 + $0x60] sm:$0xff]   ;;  %v3916_v16 = vld [vmem:[%s5050_s1 + $0x68] sm:$0xff]  }
   0x5   :  { %3092 = vmatprep.subr.bf16.mxu1 %v5063_v1  ;;  %v3884_v11 = vld [vmem:[%s5050_s1 + $0x18] sm:$0xff]   ;;  %v3903_v14 = vld [vmem:[%s5050_s1 + $0x20] sm:$0xff]   ;;  %v3922_v17 = vld [vmem:[%s5050_s1 + $0x28] sm:$0xff]  }
   0x6   :  { %v3890_v12 = vld [vmem:[%s5050_s1 + $0x98] sm:$0xff]   ;;  %v3909_v15 = vld [vmem:[%s5050_s1 + $0xa0] sm:$0xff]   ;;  %v3928_v18 = vld [vmem:[%s5050_s1 + $0xa8] sm:$0xff]  }
   0x7   :  { %2677 = vmatpush3.bf16.msra.mxu0 %v3848_v5  ;;  %v3935_v19 = vld [vmem:[%s5050_s1 + $0x70] sm:$0xff]   ;;  %v3954_v22 = vld [vmem:[%s5050_s1 + $0x78] sm:$0xff]   ;;  %v3602_v26 = vld [vmem:[%s5049_s0] ss:$12 sps:$4 sm:$0x3f]  }
   0x8   :  { %3093 = vmatpush3.bf16.msra.mxu1 %v3855_v6  ;;  %2678 = vmatprep.subr.bf16.mxu0 %v3860_v7  ;;  %v3941_v20 = vld [vmem:[%s5050_s1 + $0x30] sm:$0xff]   ;;  %v3964_v24 = vld [vmem:[%s5050_s1 + $0x38] sm:$0xff]  }
   0x9   :  { %3094 = vmatprep.subr.bf16.mxu1 %v5063_v1  ;;  %v3947_v21 = vld [vmem:[%s5050_s1 + $0xb0] sm:$0xff]   ;;  %v3971_v25 = vld [vmem:[%s5050_s1 + $0xb8] sm:$0xff]  }
   0xa   :  { %v3604_v23 = vld [vmem:[%s5049_s0 + $0x4] ss:$12 sps:$4 sm:$0x3f]   ;;  %v3605_v27 = vld [vmem:[%s5049_s0 + $0x8] ss:$12 sps:$4 sm:$0x3f]  }
   0xb   :  { %2679 = vmatpush3.bf16.msra.mxu0 %v3866_v8  ;;  %286 = vmatprep.mubr.bf16.mxu0 %v3604_v23  ;;  %v3608_v28 = vld [vmem:[%s5049_s0 + $0x34] ss:$12 sps:$4 sm:$0x3f]   ;;  %v3606_v29 = vld [vmem:[%s5049_s0 + $0x30] ss:$12 sps:$4 sm:$0x3f]  }
   0xc   :  { %3095 = vmatpush3.bf16.msra.mxu1 %v3873_v9  ;;  %2680 = vmatprep.subr.bf16.mxu0 %v3879_v10  ;;  %v3609_v30 = vld [vmem:[%s5049_s0 + $0x38] ss:$12 sps:$4 sm:$0x3f]  }
   0xd   :  { %3096 = vmatprep.subr.bf16.mxu1 %v5063_v1  ;;  %v3612_v31 = vld [vmem:[%s5049_s0 + $0x64] ss:$12 sps:$4 sm:$0x3f]  }
   0xf   :  { %2681 = vmatpush3.bf16.msra.mxu0 %v3884_v11 }
  0x10   :  { %3097 = vmatpush3.bf16.msra.mxu1 %v3890_v12  ;;  %2682 = vmatprep.subr.bf16.mxu0 %v3897_v13 }
  0x11   :  { %3098 = vmatprep.subr.bf16.mxu1 %v5063_v1 }
  0x13   :  { %2683 = vmatpush3.bf16.msra.mxu0 %v3903_v14 }
  0x14   :  { %3099 = vmatpush3.bf16.msra.mxu1 %v3909_v15  ;;  %2684 = vmatprep.subr.bf16.mxu0 %v3916_v16 }
  0x15   :  { %3100 = vmatprep.subr.bf16.mxu1 %v5063_v1 }
  0x17   :  { %2685 = vmatpush3.bf16.msra.mxu0 %v3922_v17 }
  0x18   :  { %3101 = vmatpush3.bf16.msra.mxu1 %v3928_v18  ;;  %2686 = vmatprep.subr.bf16.mxu0 %v3935_v19 }
  0x19   :  { %3102 = vmatprep.subr.bf16.mxu1 %v5063_v1 }
  0x1b   :  { %2687 = vmatpush3.bf16.msra.mxu0 %v3941_v20 }
  0x1c   :  { %3103 = vmatpush3.bf16.msra.mxu1 %v3947_v21  ;;  %2688 = vmatprep.subr.bf16.mxu0 %v3954_v22 }
  0x1d   :  { %3104 = vmatprep.subr.bf16.mxu1 %v5063_v1 }
  0x1f   :  { %2689 = vmatpush3.bf16.msra.mxu0 %v3964_v24 }
  0x20   :  { %3105 = vmatpush3.bf16.msra.mxu1 %v3971_v25  ;;  %2705 = vmatprep.subr.bf16.mxu0 %v3822_v0 }
  0x21   :  { %3110 = vmatprep.subr.bf16.mxu1 %v5063_v1 }
  0x22   :  { %287 = vmatmul.mubr.bf16.vlgmr.msra.gmra.mrb[0].mxu0 %v3602_v26 }
  0x23   :  { %3107 = vmatmul.mubr.bf16.vlgmr.msra.gmra.mrb[0].mxu1 %v3605_v27  ;;  %2706 = vmatpush3.bf16.msra.mxu0 %v3828_v2 }
  0x24   :  { %3111 = vmatpush3.bf16.msra.mxu1 %v3834_v3  ;;  %2707 = vmatprep.subr.bf16.mxu0 %v3842_v4 }
  0x25   :  { %3112 = vmatprep.subr.bf16.mxu1 %v5063_v1  ;;  %389 = vmatprep.mubr.bf16.mxu0 %v3608_v28 }
  0x26   :  { %3126 = vmatprep.mubr.msk.bf16.mxu1 %vm3755_vm0, %v5063_v1 }
  0x27   :  { %2708 = vmatpush3.bf16.msra.mxu0 %v3848_v5 }
  0x28   :  { %3113 = vmatpush3.bf16.msra.mxu1 %v3855_v6  ;;  %2709 = vmatprep.subr.bf16.mxu0 %v3860_v7 }
  0x29   :  { %3114 = vmatprep.subr.bf16.mxu1 %v5063_v1 }
  0x2b   :  { %2710 = vmatpush3.bf16.msra.mxu0 %v3866_v8 }
  0x2c   :  { %3115 = vmatpush3.bf16.msra.mxu1 %v3873_v9  ;;  %2711 = vmatprep.subr.bf16.mxu0 %v3879_v10 }
  0x2d   :  { %3116 = vmatprep.subr.bf16.mxu1 %v5063_v1 }
  0x2f   :  { %2712 = vmatpush3.bf16.msra.mxu0 %v3884_v11 }
  0x30   :  { %3117 = vmatpush3.bf16.msra.mxu1 %v3890_v12  ;;  %2713 = vmatprep.subr.bf16.mxu0 %v3897_v13 }
  0x31   :  { %3118 = vmatprep.subr.bf16.mxu1 %v5063_v1 }
  0x33   :  { %2714 = vmatpush3.bf16.msra.mxu0 %v3903_v14 }
  0x34   :  { %3119 = vmatpush3.bf16.msra.mxu1 %v3909_v15  ;;  %2715 = vmatprep.subr.bf16.mxu0 %v3916_v16 }
  0x35   :  { %3120 = vmatprep.subr.bf16.mxu1 %v5063_v1 }
  0x37   :  { %2716 = vmatpush3.bf16.msra.mxu0 %v3922_v17 }
  0x38   :  { %3121 = vmatpush3.bf16.msra.mxu1 %v3928_v18  ;;  %2717 = vmatprep.subr.bf16.mxu0 %v3935_v19 }
  0x39   :  { %3122 = vmatprep.subr.bf16.mxu1 %v5063_v1 }
  0x3b   :  { %2718 = vmatpush3.bf16.msra.mxu0 %v3941_v20 }
  0x3c   :  { %3123 = vmatpush3.bf16.msra.mxu1 %v3947_v21  ;;  %2719 = vmatprep.subr.bf16.mxu0 %v3954_v22 }
  0x3d   :  { %3124 = vmatprep.subr.bf16.mxu1 %v5063_v1 }
  0x3f   :  { %2720 = vmatpush3.bf16.msra.mxu0 %v3964_v24 }
  0x40   :  { %3125 = vmatpush3.bf16.msra.mxu1 %v3971_v25  ;;  %2736 = vmatprep.subr.bf16.mxu0 %v3822_v0 }
  0x41   :  { %3130 = vmatprep.subr.bf16.mxu1 %v5063_v1 }
  0x42   :  { %390 = vmatmul.mubr.bf16.vlgmr.msra.gmra.mrb[4].mxu0 %v3606_v29 }
  0x43   :  { %3127 = vmatmul.mubr.bf16.vlgmr.msra.gmra.mrb[4].mxu1 %v3609_v30  ;;  %2737 = vmatpush3.bf16.msra.mxu0 %v3828_v2 }
  0x44   :  { %3131 = vmatpush3.bf16.msra.mxu1 %v3834_v3  ;;  %2738 = vmatprep.subr.bf16.mxu0 %v3842_v4 }
  0x45   :  { %3132 = vmatprep.subr.bf16.mxu1 %v5063_v1  ;;  %494 = vmatprep.mubr.bf16.mxu0 %v3612_v31 }
  0x46   :  { %3146 = vmatprep.mubr.msk.bf16.mxu1 %vm3755_vm0, %v5063_v1 }
  0x47   :  { %2739 = vmatpush3.bf16.msra.mxu0 %v3848_v5 }
  0x48   :  { %3133 = vmatpush3.bf16.msra.mxu1 %v3855_v6  ;;  %2740 = vmatprep.subr.bf16.mxu0 %v3860_v7 }
  0x49   :  { %3134 = vmatprep.subr.bf16.mxu1 %v5063_v1 }
  0x4b   :  { %2741 = vmatpush3.bf16.msra.mxu0 %v3866_v8 }
  0x4c   :  { %3135 = vmatpush3.bf16.msra.mxu1 %v3873_v9  ;;  %2742 = vmatprep.subr.bf16.mxu0 %v3879_v10 }
  0x4d   :  { %3136 = vmatprep.subr.bf16.mxu1 %v5063_v1 }
  0x4f   :  { %2743 = vmatpush3.bf16.msra.mxu0 %v3884_v11 }
  0x50   :  { %3137 = vmatpush3.bf16.msra.mxu1 %v3890_v12  ;;  %2744 = vmatprep.subr.bf16.mxu0 %v3897_v13 }
  0x51   :  { %3138 = vmatprep.subr.bf16.mxu1 %v5063_v1 }
  0x53   :  { %2745 = vmatpush3.bf16.msra.mxu0 %v3903_v14 }
  0x54   :  { %3139 = vmatpush3.bf16.msra.mxu1 %v3909_v15  ;;  %2746 = vmatprep.subr.bf16.mxu0 %v3916_v16 }
  0x55   :  { %3140 = vmatprep.subr.bf16.mxu1 %v5063_v1 }
  0x57   :  { %2747 = vmatpush3.bf16.msra.mxu0 %v3922_v17 }
  0x58   :  { %3141 = vmatpush3.bf16.msra.mxu1 %v3928_v18  ;;  %2748 = vmatprep.subr.bf16.mxu0 %v3935_v19 }
  0x59   :  { %16 = vsyncpa [#allocation3], 0  ;;  %3142 = vmatprep.subr.bf16.mxu1 %v5063_v1  ;;  %v3610_v32 = vld [vmem:[%s5049_s0 + $0x60] ss:$12 sps:$4 sm:$0x3f]   ;;  %v4145_v41 = vld [vmem:[%s5052_s3 + $0x10] sm:$0xff]  }
  0x5a   :  { %v3613_v33 = vld [vmem:[%s5049_s0 + $0x68] ss:$12 sps:$4 sm:$0x3f]   ;;  %v3614_v35 = vld [vmem:[%s5049_s0 + $0x90] ss:$12 sps:$4 sm:$0x3f]  }
  0x5b   :  { %2749 = vmatpush3.bf16.msra.mxu0 %v3941_v20  ;;  %v3616_v34 = vld [vmem:[%s5049_s0 + $0x94] ss:$12 sps:$4 sm:$0x3f]   ;;  %v3617_v36 = vld [vmem:[%s5049_s0 + $0x98] ss:$12 sps:$4 sm:$0x3f]  }
  0x5c   :  { %3143 = vmatpush3.bf16.msra.mxu1 %v3947_v21  ;;  %2750 = vmatprep.subr.bf16.mxu0 %v3954_v22  ;;  %v4120_v37 = vld [vmem:[%s5052_s3] sm:$0xff]   ;;  %v4131_v39 = vld [vmem:[%s5052_s3 + $0x8] sm:$0xff]   ;;  %v4151_v42 = vld [vmem:[%s5052_s3 + $0x50] sm:$0xff]   ;;  %s3756_s21 = smov 112   ;;  %vm1218_vm1 = vcmask 916480   ;;  %vm1899_vm2 = vcmask 1040384  }
  0x5d   :  { %3144 = vmatprep.subr.bf16.mxu1 %v5063_v1  ;;  %v4125_v38 = vld [vmem:[%s5052_s3 + $0x40] sm:$0xff]   ;;  %v4137_v40 = vld [vmem:[%s5052_s3 + $0x48] sm:$0xff]   ;;  %v4159_v43 = vld [vmem:[%s5052_s3 + $0x18] sm:$0xff]   ;;  %s3758_s14 = smov [#allocation2]  }
  0x5e   :  { %v4169_v44 = vld [vmem:[%s5052_s3 + $0x20] sm:$0xff]   ;;  %v4175_v45 = vld [vmem:[%s5052_s3 + $0x58] sm:$0xff]   ;;  %v4182_v46 = vld [vmem:[%s5052_s3 + $0x28] sm:$0xff]   ;;  %s2446_s15 = sshll.u32 %s3758_s14, 4  ;;  %s2447_s15 = int_to_ptr.vmem [resolvable:$true] %s2446_s15 }
  0x5f   :  { %2751 = vmatpush3.bf16.msra.mxu0 %v3964_v24  ;;  %v4189_v47 = vld [vmem:[%s5052_s3 + $0x60] sm:$0xff]   ;;  %v4196_v48 = vld [vmem:[%s5052_s3 + $0x30] sm:$0xff]   ;;  %v4203_v49 = vld [vmem:[%s5052_s3 + $0x68] sm:$0xff]   ;;  %p3735_p1 = scmp.lt.s32.totalorder %s2447_s15, %s2447_s15 }
  0x60   :  { %3145 = vmatpush3.bf16.msra.mxu1 %v3971_v25  ;;  %2767 = vmatprep.subr.bf16.mxu0 %v3822_v0  ;;  %v4210_v50 = vld [vmem:[%s5052_s3 + $0x38] sm:$0xff]   ;;  %v4217_v51 = vld [vmem:[%s5052_s3 + $0x70] sm:$0xff]  }
  0x61   :  { %3150 = vmatprep.subr.bf16.mxu1 %v5063_v1  ;;  %v4225_v52 = vld [vmem:[%s5052_s3 + $0x78] sm:$0xff]  }
  0x62   :  { %495 = vmatmul.mubr.bf16.vlgmr.msra.gmra.mrb[8].mxu0 %v3610_v32 }
  0x63   :  { %3147 = vmatmul.mubr.bf16.vlgmr.msra.gmra.mrb[8].mxu1 %v3613_v33  ;;  %2768 = vmatpush3.bf16.msra.mxu0 %v3828_v2 }
  0x64   :  { %3151 = vmatpush3.bf16.msra.mxu1 %v3834_v3  ;;  %2769 = vmatprep.subr.bf16.mxu0 %v3842_v4 }
  0x65   :  { %3152 = vmatprep.subr.bf16.mxu1 %v5063_v1  ;;  %599 = vmatprep.mubr.bf16.mxu0 %v3616_v34 }
  0x66   :  { %3166 = vmatprep.mubr.msk.bf16.mxu1 %vm3755_vm0, %v5063_v1 }
  0x67   :  { %2770 = vmatpush3.bf16.msra.mxu0 %v3848_v5 }
  0x68   :  { %3153 = vmatpush3.bf16.msra.mxu1 %v3855_v6  ;;  %2771 = vmatprep.subr.bf16.mxu0 %v3860_v7 }
  0x69   :  { %3154 = vmatprep.subr.bf16.mxu1 %v5063_v1 }
  0x6b   :  { %2772 = vmatpush3.bf16.msra.mxu0 %v3866_v8 }
  0x6c   :  { %3155 = vmatpush3.bf16.msra.mxu1 %v3873_v9  ;;  %2773 = vmatprep.subr.bf16.mxu0 %v3879_v10 }
  0x6d   :  { %3156 = vmatprep.subr.bf16.mxu1 %v5063_v1 }
  0x6f   :  { %2774 = vmatpush3.bf16.msra.mxu0 %v3884_v11 }
  0x70   :  { %3157 = vmatpush3.bf16.msra.mxu1 %v3890_v12  ;;  %2775 = vmatprep.subr.bf16.mxu0 %v3897_v13 }
  0x71   :  { %3158 = vmatprep.subr.bf16.mxu1 %v5063_v1 }
  0x73   :  { %2776 = vmatpush3.bf16.msra.mxu0 %v3903_v14 }
  0x74   :  { %3159 = vmatpush3.bf16.msra.mxu1 %v3909_v15  ;;  %2777 = vmatprep.subr.bf16.mxu0 %v3916_v16 }
  0x75   :  { %3160 = vmatprep.subr.bf16.mxu1 %v5063_v1 }
  0x77   :  { %2778 = vmatpush3.bf16.msra.mxu0 %v3922_v17 }
  0x78   :  { %3161 = vmatpush3.bf16.msra.mxu1 %v3928_v18  ;;  %2779 = vmatprep.subr.bf16.mxu0 %v3935_v19 }
  0x79   :  { %3162 = vmatprep.subr.bf16.mxu1 %v5063_v1 }
  0x7b   :  { %2780 = vmatpush3.bf16.msra.mxu0 %v3941_v20 }
  0x7c   :  { %3163 = vmatpush3.bf16.msra.mxu1 %v3947_v21  ;;  %2781 = vmatprep.subr.bf16.mxu0 %v3954_v22 }
  0x7d   :  { %3164 = vmatprep.subr.bf16.mxu1 %v5063_v1 }
  0x7f   :  { %2782 = vmatpush3.bf16.msra.mxu0 %v3964_v24 }
  0x80   :  { %3165 = vmatpush3.bf16.msra.mxu1 %v3971_v25  ;;  %3170 = vmatprep.subr.bf16.mxu0 %v5063_v1 }
  0x81   :  { %3190 = vmatprep.subr.bf16.mxu1 %v5063_v1 }
  0x82   :  { %600 = vmatmul.mubr.bf16.vlgmr.msra.gmra.mrb[12].mxu0 %v3614_v35 }
  0x83   :  { %3167 = vmatmul.mubr.bf16.vlgmr.msra.gmra.mrb[12].mxu1 %v3617_v36  ;;  %3186 = vmatprep.mubr.msk.bf16.mxu0 %vm3755_vm0, %v5063_v1 }
  0x84   :  { %3206 = vmatprep.mubr.msk.bf16.mxu1 %vm3755_vm0, %v5063_v1  ;;  %3191 = vmatpush3.bf16.msra.mxu1 %v4120_v37 }
  0x85   :  { %3171 = vmatpush3.bf16.msra.mxu0 %v4125_v38  ;;  %3192 = vmatprep.subr.bf16.mxu1 %v5063_v1 }
  0x86   :  { %3172 = vmatprep.subr.bf16.mxu0 %v5063_v1 }
  0x88   :  { %3193 = vmatpush3.bf16.msra.mxu1 %v4131_v39 }
  0x89   :  { %3173 = vmatpush3.bf16.msra.mxu0 %v4137_v40  ;;  %3194 = vmatprep.subr.bf16.mxu1 %v5063_v1 }
  0x8a   :  { %3174 = vmatprep.subr.bf16.mxu0 %v5063_v1 }
  0x8c   :  { %3195 = vmatpush3.bf16.msra.mxu1 %v4145_v41 }
  0x8d   :  { %3175 = vmatpush3.bf16.msra.mxu0 %v4151_v42  ;;  %3196 = vmatprep.subr.bf16.mxu1 %v5063_v1 }
  0x8e   :  { %3176 = vmatprep.subr.bf16.mxu0 %v5063_v1 }
  0x90   :  { %3197 = vmatpush3.bf16.msra.mxu1 %v4159_v43 }
  0x91   :  { %3198 = vmatprep.subr.bf16.mxu1 %v5063_v1  ;;  %3177 = vmatpush3.bf16.msra.mxu0 %v4175_v45 }
  0x92   :  { %3178 = vmatprep.subr.bf16.mxu0 %v5063_v1 }
  0x94   :  { %3199 = vmatpush3.bf16.msra.mxu1 %v4169_v44 }
  0x95   :  { %3200 = vmatprep.subr.bf16.mxu1 %v5063_v1  ;;  %3179 = vmatpush3.bf16.msra.mxu0 %v4189_v47 }
  0x96   :  { %3180 = vmatprep.subr.bf16.mxu0 %v5063_v1 }
  0x98   :  { %3201 = vmatpush3.bf16.msra.mxu1 %v4182_v46 }
  0x99   :  { %3202 = vmatprep.subr.bf16.mxu1 %v5063_v1  ;;  %3181 = vmatpush3.bf16.msra.mxu0 %v4203_v49 }
  0x9a   :  { %3182 = vmatprep.subr.bf16.mxu0 %v5063_v1 }
  0x9c   :  { %3203 = vmatpush3.bf16.msra.mxu1 %v4196_v48 }
  0x9d   :  { %3204 = vmatprep.subr.bf16.mxu1 %v5063_v1  ;;  %3183 = vmatpush3.bf16.msra.mxu0 %v4217_v51 }
  0x9e   :  { %3184 = vmatprep.subr.bf16.mxu0 %v5063_v1 }
  0xa0   :  { %3205 = vmatpush3.bf16.msra.mxu1 %v4210_v50 }
  0xa1   :  { %3230 = vmatprep.subr.bf16.mxu1 %v5063_v1  ;;  %3185 = vmatpush3.bf16.msra.mxu0 %v4225_v52 }
  0xa2   :  { %3210 = vmatprep.subr.bf16.mxu0 %v5063_v1 }
  0xf5   :  { %v2690_v53 = vpop.f32.mrb[0].mxu0 }
  0xf6   :  { %v2691_v54 = vpop.f32.mrb[1].mxu0  ;;  %v329_v55 = vpop.f32.mrb[0].mxu1 }
  0xf7   :  { %v2692_v56 = vadd.f32 %v2691_v54, %v2690_v53  ;;  %v2693_v57 = vpop.f32.mrb[2].mxu0  ;;  %v3108_v58 = vpop.f32.mrb[1].mxu1 }
  0xf8   :  { %v2694_v59 = vpop.f32.mrb[3].mxu0  ;;  %v332_v60 = vpop.f32.mrb[2].mxu1  ;;  %v4232_v58 = vld [vmem:[%s5051_s2] ss:$0 sm:$0xff] }
  0xf9   :  { %v330_v61 = vadd.f32 %v2692_v56, %v329_v55  ;;  %v2695_v62 = vadd.f32 %v2694_v59, %v2693_v57  ;;  %v3109_v63 = vpop.f32.mrb[3].mxu1 }
  0xfb   :  { %v333_v0 = vadd.f32 %v2695_v62, %v332_v60 }
 0x115   :  { %v2721_v2 = vpop.f32.mrb[4].mxu0 }
 0x116   :  { %v2722_v3 = vpop.f32.mrb[5].mxu0  ;;  %v432_v4 = vpop.f32.mrb[4].mxu1 }
 0x117   :  { %v2723_v5 = vadd.f32 %v2722_v3, %v2721_v2  ;;  %v2724_v6 = vpop.f32.mrb[6].mxu0  ;;  %v3128_v7 = vpop.f32.mrb[5].mxu1  ;;  %v4239_v3 = vld [vmem:[%s5052_s3 + $0xc0] sm:$0xff]  }
 0x118   :  { %v2725_v8 = vpop.f32.mrb[7].mxu0  ;;  %v435_v9 = vpop.f32.mrb[6].mxu1 }
 0x119   :  { %v433_v10 = vadd.f32 %v2723_v5, %v432_v4  ;;  %v2726_v11 = vadd.f32 %v2725_v8, %v2724_v6  ;;  %v3129_v12 = vpop.f32.mrb[7].mxu1  ;;  %v4249_v6 = vld [vmem:[%s5052_s3 + $0xc8] sm:$0xff]  }
 0x11a   :  { %v4271_v12 = vld [vmem:[%s5052_s3 + $0x88] sm:$0xff]  }
 0x11b   :  { %v439_v13 = vmax.f32 %v330_v61, %v433_v10  ;;  %v436_v14 = vadd.f32 %v2726_v11, %v435_v9  ;;  %v4258_v9 = vld [vmem:[%s5052_s3 + $0x80] sm:$0xff]   ;;  %v4264_v11 = vld [vmem:[%s5052_s3 + $0xd0] sm:$0xff]  }
 0x11d   :  { %v440_v15 = vmax.f32 %v333_v0, %v436_v14  ;;  %v4287_v14 = vld [vmem:[%s5052_s3 + $0x90] sm:$0xff]  }
 0x135   :  { %v2752_v16 = vpop.f32.mrb[8].mxu0 }
 0x136   :  { %v2753_v17 = vpop.f32.mrb[9].mxu0  ;;  %v537_v18 = vpop.f32.mrb[8].mxu1 }
 0x137   :  { %v2754_v19 = vadd.f32 %v2753_v17, %v2752_v16  ;;  %v2755_v20 = vpop.f32.mrb[10].mxu0  ;;  %v3148_v21 = vpop.f32.mrb[9].mxu1  ;;  %v4301_v16 = vld [vmem:[%s5052_s3 + $0x98] sm:$0xff]   ;;  %v4308_v17 = vld [vmem:[%s5052_s3 + $0xe8] sm:$0xff]  }
 0x138   :  { %v2756_v22 = vpop.f32.mrb[11].mxu0  ;;  %v540_v23 = vpop.f32.mrb[10].mxu1  ;;  %v4336_v21 = vld [vmem:[%s5052_s3 + $0xf8] sm:$0xff]  }
 0x139   :  { %v538_v25 = vadd.f32 %v2754_v19, %v537_v18  ;;  %v2757_v26 = vadd.f32 %v2756_v22, %v2755_v20  ;;  %v3149_v27 = vpop.f32.mrb[11].mxu1  ;;  %v4315_v18 = vld [vmem:[%s5052_s3 + $0xa0] sm:$0xff]   ;;  %v4322_v19 = vld [vmem:[%s5052_s3 + $0xf0] sm:$0xff]   ;;  %v4329_v20 = vld [vmem:[%s5052_s3 + $0xa8] sm:$0xff]  }
 0x13b   :  { %v544_v28 = vmax.f32 %v439_v13, %v538_v25  ;;  %v541_v29 = vadd.f32 %v2757_v26, %v540_v23  ;;  %v4280_v13 = vld [vmem:[%s5052_s3 + $0xd8] sm:$0xff]   ;;  %v4343_v25 = vld [vmem:[%s5052_s3 + $0xb0] sm:$0xff]  }
 0x13c   :  { %v3660_v26 = vld [vmem:[%s5049_s0 + $0x1c] ss:$12 sps:$4 sm:$0x3f]  }
 0x13d   :  { %v545_v30 = vmax.f32 %v440_v15, %v541_v29  ;;  %v4294_v15 = vld [vmem:[%s5052_s3 + $0xe0] sm:$0xff]   ;;  %v4360_v29 = vld [vmem:[%s5052_s3 + $0xb8] sm:$0xff]  }
 0x155   :  { %v2783_v31 = vpop.f32.mrb[12].mxu0 }
 0x156   :  { %v642_v32 = vpop.f32.mrb[12].mxu1  ;;  %v2784_v33 = vpop.f32.mrb[13].mxu0 }
 0x157   :  { %v2785_v34 = vadd.f32 %v2784_v33, %v2783_v31  ;;  %v3168_v35 = vpop.f32.mrb[13].mxu1  ;;  %v2786_v36 = vpop.f32.mrb[14].mxu0  ;;  %v4372_v31 = vld [vmem:[%s5050_s1 + $0x48] sm:$0xff]  }
 0x158   :  { %v645_v53 = vpop.f32.mrb[14].mxu1  ;;  %v2787_v54 = vpop.f32.mrb[15].mxu0  ;;  %v4392_v35 = vld [vmem:[%s5050_s1 + $0x50] sm:$0xff]  }
 0x159   :  { %v643_v55 = vadd.f32 %v2785_v34, %v642_v32  ;;  %v2788_v56 = vadd.f32 %v2787_v54, %v2786_v36  ;;  %v3169_v57 = vpop.f32.mrb[15].mxu1  ;;  %v4379_v32 = vld [vmem:[%s5052_s3 + $0x100] sm:$0xff]   ;;  %v4386_v34 = vld [vmem:[%s5050_s1 + $0x8] sm:$0xff]   ;;  %v4413_v54 = vld [vmem:[%s5050_s1 + $0x58] sm:$0xff]  }
 0x15a   :  { %v4399_v36 = vld [vmem:[%s5052_s3 + $0x108] sm:$0xff]   ;;  %v4432_v57 = vld [vmem:[%s5050_s1 + $0x60] sm:$0xff]  }
 0x15b   :  { %v649_v59 = vmax.f32 %v544_v28, %v643_v55  ;;  %v646_v60 = vadd.f32 %v2788_v56, %v645_v53  ;;  %v4353_v28 = vld [vmem:[%s5050_s1 + $0x40] sm:$0xff]   ;;  %v4407_v53 = vld [vmem:[%s5050_s1 + $0x10] sm:$0xff]   ;;  %v4426_v56 = vld [vmem:[%s5050_s1 + $0x18] sm:$0xff]  }
 0x15c   :  { %v4420_v55 = vld [vmem:[%s5052_s3 + $0x110] sm:$0xff]  }
 0x15d   :  { %v657_v61 = vadd.f32 %v4232_v58, %v649_v59  ;;  %v650_v62 = vmax.f32 %v545_v30, %v646_v60  ;;  %v4366_v30 = vld [vmem:[%s5050_s1] sm:$0xff]   ;;  %v4439_v59 = vld [vmem:[%s5052_s3 + $0x118] sm:$0xff]  }
 0x15e   :  { %5068 = vst [vmem:[#allocation5_spill] sm:$0xff] %v4439_v59  ;;  %v4445_v60 = vld [vmem:[%s5050_s1 + $0x20] sm:$0xff]  }
 0x15f   :  { %v658_v63 = vadd.f32 %v4232_v58, %v650_v62  ;;  %v659_v0 = vmax.f32 %v657_v61, 0.0  ;;  %v4451_v61 = vld [vmem:[%s5050_s1 + $0x68] sm:$0xff]   ;;  %v4458_v62 = vld [vmem:[%s5052_s3 + $0x120] sm:$0xff]  }
 0x160   :  { %5069 = vst [vmem:[#allocation6_spill] sm:$0xff] %v4458_v62 }
 0x161   :  { %v660_v2 = vmax.f32 %v658_v63, 0.0  ;;  %v4464_v63 = vld [vmem:[%s5050_s1 + $0x28] sm:$0xff]  }
 0x163   :  { %v4241_v4 = vpack.c.bf16 %v660_v2, %v659_v0  ;;  %v4470_v0 = vld [vmem:[%s5050_s1 + $0x70] sm:$0xff]   ;;  %v4477_v2 = vld [vmem:[%s5052_s3 + $0x128] sm:$0xff]  }
 0x164   :  { %5070 = vst [vmem:[#allocation7_spill] sm:$0xff] %v4477_v2 }
 0x165   :  { %3207 = vmatmul.mubr.bf16.vlgmr.msra.gmra.mrb[16].mxu1 %v4241_v4  ;;  %v698_v5 = vshll.u32 %v4241_v4, 16  ;;  %v696_v7 = vshrl.u32 %v4241_v4, 16  ;;  %v897_v33 = vrot.slane %v4241_v4, 1 }
 0x166   :  { %3231 = vmatpush3.bf16.msra.mxu1 %v4239_v3  ;;  %3246 = vmatprep.mubr.msk.bf16.mxu1 %vm3755_vm0, %v5063_v1 }
 0x167   :  { %3232 = vmatprep.subr.bf16.mxu1 %v5063_v1  ;;  %v700_v8 = vrot.slane %v698_v5, 1  ;;  %v1005_v22 = vrot.slane %v696_v7, 1  ;;  %v1006_v23 = vrot.slane %v698_v5, 2  ;;  %v4483_v5 = vld [vmem:[%s5050_s1 + $0x30] sm:$0xff]  }
 0x169   :  { %v701_v10 = vor.u32 %v700_v8, %v696_v7  ;;  %v1007_v27 = vor.u32 %v1006_v23, %v1005_v22  ;;  %v4489_v7 = vld [vmem:[%s5050_s1 + $0x78] sm:$0xff]   ;;  %v4496_v8 = vld [vmem:[%s5052_s3 + $0x130] sm:$0xff]  }
 0x16a   :  { %3233 = vmatpush3.bf16.msra.mxu1 %v4249_v6  ;;  %5071 = vst [vmem:[#allocation8_spill] sm:$0xff] %v4496_v8  ;;  %v3664_v22 = vld [vmem:[%s5049_s0 + $0x4c] ss:$12 sps:$4 sm:$0x3f]  }
 0x16b   :  { %3187 = vmatmul.mubr.bf16.vlgmr.msra.gmra.mrb[16].mxu0 %v701_v10  ;;  %3234 = vmatprep.subr.bf16.mxu1 %v5063_v1  ;;  %v3658_v10 = vld [vmem:[%s5049_s0 + $0x18] ss:$12 sps:$4 sm:$0x3f]  }
 0x16c   :  { %3211 = vmatpush3.bf16.msra.mxu0 %v4258_v9  ;;  %3226 = vmatprep.mubr.msk.bf16.mxu0 %vm3755_vm0, %v5063_v1  ;;  %v4511_v23 = vld [vmem:[%s5052_s3 + $0x138] sm:$0xff]  }
 0x16d   :  { %3212 = vmatprep.subr.bf16.mxu0 %v5063_v1  ;;  %5072 = vst [vmem:[#allocation9_spill] sm:$0xff] %v4511_v23 }
 0x16e   :  { %3235 = vmatpush3.bf16.msra.mxu1 %v4264_v11 }
 0x16f   :  { %3236 = vmatprep.subr.bf16.mxu1 %v5063_v1 }
 0x170   :  { %3213 = vmatpush3.bf16.msra.mxu0 %v4271_v12 }
 0x171   :  { %3214 = vmatprep.subr.bf16.mxu0 %v5063_v1 }
 0x172   :  { %3237 = vmatpush3.bf16.msra.mxu1 %v4280_v13 }
 0x173   :  { %3238 = vmatprep.subr.bf16.mxu1 %v5063_v1 }
 0x174   :  { %3215 = vmatpush3.bf16.msra.mxu0 %v4287_v14 }
 0x175   :  { %3216 = vmatprep.subr.bf16.mxu0 %v5063_v1 }
 0x176   :  { %3239 = vmatpush3.bf16.msra.mxu1 %v4294_v15 }
 0x177   :  { %3240 = vmatprep.subr.bf16.mxu1 %v5063_v1 }
 0x178   :  { %3217 = vmatpush3.bf16.msra.mxu0 %v4301_v16 }
 0x179   :  { %3218 = vmatprep.subr.bf16.mxu0 %v5063_v1 }
 0x17a   :  { %3241 = vmatpush3.bf16.msra.mxu1 %v4308_v17 }
 0x17b   :  { %3242 = vmatprep.subr.bf16.mxu1 %v5063_v1 }
 0x17c   :  { %3219 = vmatpush3.bf16.msra.mxu0 %v4315_v18 }
 0x17d   :  { %3220 = vmatprep.subr.bf16.mxu0 %v5063_v1 }
 0x17e   :  { %3243 = vmatpush3.bf16.msra.mxu1 %v4322_v19 }
 0x17f   :  { %3244 = vmatprep.subr.bf16.mxu1 %v5063_v1 }
 0x180   :  { %3221 = vmatpush3.bf16.msra.mxu0 %v4329_v20 }
 0x181   :  { %3222 = vmatprep.subr.bf16.mxu0 %v5063_v1 }
 0x182   :  { %3245 = vmatpush3.bf16.msra.mxu1 %v4336_v21 }
 0x183   :  { %2843 = vmatprep.subr.bf16.mxu1 %v4353_v28 }
 0x184   :  { %3223 = vmatpush3.bf16.msra.mxu0 %v4343_v25 }
 0x185   :  { %3247 = vmatmul.mubr.bf16.vlgmr.msra.gmra.mrb[20].mxu1 %v1007_v27  ;;  %3224 = vmatprep.subr.bf16.mxu0 %v5063_v1  ;;  %v4544_v27 = vld [vmem:[%s5050_s1 + $0x90] sm:$0xff]  }
 0x186   :  { %2844 = vmatpush3.bf16.msra.mxu1 %v4366_v30  ;;  %1285 = vmatprep.mubr.bf16.mxu1 %v3660_v26  ;;  %v4524_v26 = vld [vmem:[%s5050_s1 + $0x80] sm:$0xff]  }
 0x187   :  { %2845 = vmatprep.subr.bf16.mxu1 %v4372_v31 }
 0x188   :  { %3225 = vmatpush3.bf16.msra.mxu0 %v4360_v29 }
 0x189   :  { %3250 = vmatprep.subr.bf16.mxu0 %v5063_v1 }
 0x18a   :  { %2846 = vmatpush3.bf16.msra.mxu1 %v4386_v34 }
 0x18b   :  { %3227 = vmatmul.mubr.bf16.vlgmr.msra.gmra.mrb[20].mxu0 %v897_v33  ;;  %2847 = vmatprep.subr.bf16.mxu1 %v4392_v35  ;;  %v4553_v33 = vld [vmem:[%s5050_s1 + $0x98] sm:$0xff]  }
 0x18c   :  { %3251 = vmatpush3.bf16.msra.mxu0 %v4379_v32  ;;  %3266 = vmatprep.mubr.msk.bf16.mxu0 %vm3755_vm0, %v5063_v1 }
 0x18d   :  { %3252 = vmatprep.subr.bf16.mxu0 %v5063_v1 }
 0x18e   :  { %2848 = vmatpush3.bf16.msra.mxu1 %v4407_v53 }
 0x18f   :  { %2849 = vmatprep.subr.bf16.mxu1 %v4413_v54 }
 0x190   :  { %3253 = vmatpush3.bf16.msra.mxu0 %v4399_v36 }
 0x191   :  { %3254 = vmatprep.subr.bf16.mxu0 %v5063_v1 }
 0x192   :  { %2850 = vmatpush3.bf16.msra.mxu1 %v4426_v56 }
 0x193   :  { %2851 = vmatprep.subr.bf16.mxu1 %v4432_v57 }
 0x194   :  { %3255 = vmatpush3.bf16.msra.mxu0 %v4420_v55 }
 0x195   :  { %3256 = vmatprep.subr.bf16.mxu0 %v5063_v1 }
 0x196   :  { %2852 = vmatpush3.bf16.msra.mxu1 %v4445_v60 }
 0x197   :  { %2853 = vmatprep.subr.bf16.mxu1 %v4451_v61 }
 0x198   :  { %3257 = vmatpush3.bf16.msra.mxu0 %v4439_v59  ;;  %v4603_v59 = vld [vmem:[%s5050_s1 + $0xb8] sm:$0xff]  }
 0x199   :  { %3258 = vmatprep.subr.bf16.mxu0 %v5063_v1 }
 0x19a   :  { %2854 = vmatpush3.bf16.msra.mxu1 %v4464_v63 }
 0x19b   :  { %2855 = vmatprep.subr.bf16.mxu1 %v4470_v0 }
 0x19c   :  { %3259 = vmatpush3.bf16.msra.mxu0 %v4458_v62  ;;  %v3661_v62 = vld [vmem:[%s5049_s0 + $0x20] ss:$12 sps:$4 sm:$0x3f]  }
 0x19d   :  { %3260 = vmatprep.subr.bf16.mxu0 %v5063_v1 }
 0x19e   :  { %2856 = vmatpush3.bf16.msra.mxu1 %v4483_v5 }
 0x19f   :  { %2857 = vmatprep.subr.bf16.mxu1 %v4489_v7 }
 0x1a0   :  { %3261 = vmatpush3.bf16.msra.mxu0 %v4477_v2  ;;  %v5073_v2 = vmov 0.0  }
 0x1a1   :  { %3262 = vmatprep.subr.bf16.mxu0 %v5063_v1 }
 0x1a2   :  { %2858 = vmatpush3.bf16.msra.mxu1 %v3964_v24  ;;  %v1115_v24 = vrot.slane %v4241_v4, 2  ;;  %v4535_v4 = vld [vmem:[%s5050_s1 + $0x88] sm:$0xff]  }
 0x1a3   :  { %2874 = vmatprep.subr.bf16.mxu1 %v4353_v28 }
 0x1a4   :  { %3263 = vmatpush3.bf16.msra.mxu0 %v4496_v8  ;;  %v3668_v8 = vld [vmem:[%s5049_s0 + $0x7c] ss:$12 sps:$4 sm:$0x3f]  }
 0x1a5   :  { %3264 = vmatprep.subr.bf16.mxu0 %v5063_v1  ;;  %1286 = vmatmul.mubr.bf16.vlgmr.msra.gmra.mrb[24].mxu1 %v3658_v10  ;;  %v4562_v10 = vld [vmem:[%s5050_s1 + $0xa0] sm:$0xff]  }
 0x1a6   :  { %2875 = vmatpush3.bf16.msra.mxu1 %v4366_v30  ;;  %1388 = vmatprep.mubr.bf16.mxu1 %v3664_v22  ;;  %v4571_v22 = vld [vmem:[%s5050_s1 + $0xa8] sm:$0xff]  }
 0x1a7   :  { %2876 = vmatprep.subr.bf16.mxu1 %v4372_v31 }
 0x1a8   :  { %3265 = vmatpush3.bf16.msra.mxu0 %v4511_v23  ;;  %v4581_v23 = vld [vmem:[%s5050_s1 + $0x38] sm:$0xff]  }
 0x1a9   :  { %3270 = vmatprep.subr.bf16.mxu0 %v5063_v1 }
 0x1aa   :  { %2877 = vmatpush3.bf16.msra.mxu1 %v4386_v34 }
 0x1ab   :  { %3267 = vmatmul.mubr.bf16.vlgmr.msra.gmra.mrb[24].mxu0 %v1115_v24  ;;  %2878 = vmatprep.subr.bf16.mxu1 %v4392_v35  ;;  %v3662_v24 = vld [vmem:[%s5049_s0 + $0x48] ss:$12 sps:$4 sm:$0x3f]  }
 0x1ac   :  { %3271 = vmatpush3.bf16.msra.mxu0 %v4524_v26  ;;  %3286 = vmatprep.mubr.msk.bf16.mxu0 %vm3755_vm0, %v5063_v1 }
 0x1ad   :  { %3272 = vmatprep.subr.bf16.mxu0 %v5063_v1 }
 0x1ae   :  { %2879 = vmatpush3.bf16.msra.mxu1 %v4407_v53 }
 0x1af   :  { %2880 = vmatprep.subr.bf16.mxu1 %v4413_v54 }
 0x1b0   :  { %3273 = vmatpush3.bf16.msra.mxu0 %v4535_v4 }
 0x1b1   :  { %3274 = vmatprep.subr.bf16.mxu0 %v5063_v1 }
 0x1b2   :  { %2881 = vmatpush3.bf16.msra.mxu1 %v4426_v56 }
 0x1b3   :  { %2882 = vmatprep.subr.bf16.mxu1 %v4432_v57 }
 0x1b4   :  { %3275 = vmatpush3.bf16.msra.mxu0 %v4544_v27 }
 0x1b5   :  { %3276 = vmatprep.subr.bf16.mxu0 %v5063_v1 }
 0x1b6   :  { %2883 = vmatpush3.bf16.msra.mxu1 %v4445_v60 }
 0x1b7   :  { %2884 = vmatprep.subr.bf16.mxu1 %v4451_v61 }
 0x1b8   :  { %3277 = vmatpush3.bf16.msra.mxu0 %v4553_v33 }
 0x1b9   :  { %3278 = vmatprep.subr.bf16.mxu0 %v5063_v1 }
 0x1ba   :  { %2885 = vmatpush3.bf16.msra.mxu1 %v4464_v63 }
 0x1bb   :  { %2886 = vmatprep.subr.bf16.mxu1 %v4470_v0 }
 0x1bc   :  { %3279 = vmatpush3.bf16.msra.mxu0 %v4562_v10 }
 0x1bd   :  { %3280 = vmatprep.subr.bf16.mxu0 %v5063_v1 }
 0x1be   :  { %2887 = vmatpush3.bf16.msra.mxu1 %v4483_v5 }
 0x1bf   :  { %2888 = vmatprep.subr.bf16.mxu1 %v4489_v7 }
 0x1c0   :  { %3281 = vmatpush3.bf16.msra.mxu0 %v4571_v22 }
 0x1c1   :  { %3282 = vmatprep.subr.bf16.mxu0 %v5063_v1  ;;  %v4591_v1 = vld [vmem:[%s5050_s1 + $0xb0] sm:$0xff]  }
 0x1c2   :  { %2889 = vmatpush3.bf16.msra.mxu1 %v4581_v23 }
 0x1c3   :  { %2905 = vmatprep.subr.bf16.mxu1 %v4353_v28 }
 0x1c4   :  { %3283 = vmatpush3.bf16.msra.mxu0 %v4591_v1 }
 0x1c5   :  { %3284 = vmatprep.subr.bf16.mxu0 %v5073_v2  ;;  %1389 = vmatmul.mubr.bf16.vlgmr.msra.gmra.mrb[28].mxu1 %v3662_v24  ;;  %v3665_v24 = vld [vmem:[%s5049_s0 + $0x50] ss:$12 sps:$4 sm:$0x3f]  }
 0x1c6   :  { %2906 = vmatpush3.bf16.msra.mxu1 %v4366_v30  ;;  %1493 = vmatprep.mubr.bf16.mxu1 %v3668_v8  ;;  %v3672_v8 = vld [vmem:[%s5049_s0 + $0xac] ss:$12 sps:$4 sm:$0x3f]  }
 0x1c7   :  { %2907 = vmatprep.subr.bf16.mxu1 %v4372_v31 }
 0x1c8   :  { %3285 = vmatpush3.bf16.msra.mxu0 %v4603_v59 }
 0x1c9   :  { %3290 = vmatprep.subr.bf16.mxu0 %v5073_v2 }
 0x1ca   :  { %2908 = vmatpush3.bf16.msra.mxu1 %v4386_v34 }
 0x1cb   :  { %3287 = vmatmul.mubr.bf16.vlgmr.msra.gmra.mrb[28].mxu0 %v3661_v62  ;;  %2909 = vmatprep.subr.bf16.mxu1 %v4392_v35  ;;  %v3666_v62 = vld [vmem:[%s5049_s0 + $0x78] ss:$12 sps:$4 sm:$0x3f]  }
 0x1cc   :  { %3291 = vmatpush3.bf16.msra.mxu0 %v4524_v26  ;;  %3306 = vmatprep.mubr.msk.bf16.mxu0 %vm3755_vm0, %v5073_v2 }
 0x1cd   :  { %3292 = vmatprep.subr.bf16.mxu0 %v5073_v2 }
 0x1ce   :  { %2910 = vmatpush3.bf16.msra.mxu1 %v4407_v53 }
 0x1cf   :  { %2911 = vmatprep.subr.bf16.mxu1 %v4413_v54 }
 0x1d0   :  { %3293 = vmatpush3.bf16.msra.mxu0 %v4535_v4 }
 0x1d1   :  { %3294 = vmatprep.subr.bf16.mxu0 %v5073_v2 }
 0x1d2   :  { %2912 = vmatpush3.bf16.msra.mxu1 %v4426_v56 }
 0x1d3   :  { %2913 = vmatprep.subr.bf16.mxu1 %v4432_v57 }
 0x1d4   :  { %3295 = vmatpush3.bf16.msra.mxu0 %v4544_v27 }
 0x1d5   :  { %3296 = vmatprep.subr.bf16.mxu0 %v5073_v2 }
 0x1d6   :  { %2914 = vmatpush3.bf16.msra.mxu1 %v4445_v60 }
 0x1d7   :  { %2915 = vmatprep.subr.bf16.mxu1 %v4451_v61 }
 0x1d8   :  { %3297 = vmatpush3.bf16.msra.mxu0 %v4553_v33 }
 0x1d9   :  { %3298 = vmatprep.subr.bf16.mxu0 %v5073_v2 }
 0x1da   :  { %2916 = vmatpush3.bf16.msra.mxu1 %v4464_v63 }
 0x1db   :  { %2917 = vmatprep.subr.bf16.mxu1 %v4470_v0 }
 0x1dc   :  { %3299 = vmatpush3.bf16.msra.mxu0 %v4562_v10 }
 0x1dd   :  { %3300 = vmatprep.subr.bf16.mxu0 %v5073_v2 }
 0x1de   :  { %2918 = vmatpush3.bf16.msra.mxu1 %v4483_v5 }
 0x1df   :  { %2919 = vmatprep.subr.bf16.mxu1 %v4489_v7 }
 0x1e0   :  { %3301 = vmatpush3.bf16.msra.mxu0 %v4571_v22 }
 0x1e1   :  { %3302 = vmatprep.subr.bf16.mxu0 %v5073_v2 }
 0x1e2   :  { %2920 = vmatpush3.bf16.msra.mxu1 %v4581_v23 }
 0x1e3   :  { %2936 = vmatprep.subr.bf16.mxu1 %v4353_v28  ;;  %v3670_v28 = vld [vmem:[%s5049_s0 + $0xa8] ss:$12 sps:$4 sm:$0x3f]  }
 0x1e4   :  { %3303 = vmatpush3.bf16.msra.mxu0 %v4591_v1 }
 0x1e5   :  { %3304 = vmatprep.subr.bf16.mxu0 %v5073_v2  ;;  %1494 = vmatmul.mubr.bf16.vlgmr.msra.gmra.mrb[32].mxu1 %v3666_v62 }
 0x1e6   :  { %2937 = vmatpush3.bf16.msra.mxu1 %v4366_v30  ;;  %1598 = vmatprep.mubr.bf16.mxu1 %v3672_v8  ;;  %v3669_v30 = vld [vmem:[%s5049_s0 + $0x80] ss:$12 sps:$4 sm:$0x3f]  }
 0x1e7   :  { %2938 = vmatprep.subr.bf16.mxu1 %v4372_v31 }
 0x1e8   :  { %3305 = vmatpush3.bf16.msra.mxu0 %v4603_v59 }
 0x1e9   :  { %3310 = vmatprep.subr.bf16.mxu0 %v5073_v2 }
 0x1ea   :  { %2939 = vmatpush3.bf16.msra.mxu1 %v4386_v34 }
 0x1eb   :  { %3307 = vmatmul.mubr.bf16.vlgmr.msra.gmra.mrb[32].mxu0 %v3665_v24  ;;  %2940 = vmatprep.subr.bf16.mxu1 %v4392_v35 }
 0x1ec   :  { %3311 = vmatpush3.bf16.msra.mxu0 %v4524_v26  ;;  %3326 = vmatprep.mubr.msk.bf16.mxu0 %vm3755_vm0, %v5073_v2 }
 0x1ed   :  { %3312 = vmatprep.subr.bf16.mxu0 %v5073_v2 }
 0x1ee   :  { %2941 = vmatpush3.bf16.msra.mxu1 %v4407_v53 }
 0x1ef   :  { %2942 = vmatprep.subr.bf16.mxu1 %v4413_v54 }
 0x1f0   :  { %3313 = vmatpush3.bf16.msra.mxu0 %v4535_v4 }
 0x1f1   :  { %3314 = vmatprep.subr.bf16.mxu0 %v5073_v2 }
 0x1f2   :  { %2943 = vmatpush3.bf16.msra.mxu1 %v4426_v56 }
 0x1f3   :  { %2944 = vmatprep.subr.bf16.mxu1 %v4432_v57 }
 0x1f4   :  { %3315 = vmatpush3.bf16.msra.mxu0 %v4544_v27 }
 0x1f5   :  { %3316 = vmatprep.subr.bf16.mxu0 %v5073_v2 }
 0x1f6   :  { %2945 = vmatpush3.bf16.msra.mxu1 %v4445_v60 }
 0x1f7   :  { %2946 = vmatprep.subr.bf16.mxu1 %v4451_v61 }
 0x1f8   :  { %3317 = vmatpush3.bf16.msra.mxu0 %v4553_v33 }
 0x1f9   :  { %3318 = vmatprep.subr.bf16.mxu0 %v5073_v2 }
 0x1fa   :  { %2947 = vmatpush3.bf16.msra.mxu1 %v4464_v63 }
 0x1fb   :  { %2948 = vmatprep.subr.bf16.mxu1 %v4470_v0 }
 0x1fc   :  { %3319 = vmatpush3.bf16.msra.mxu0 %v4562_v10 }
 0x1fd   :  { %3320 = vmatprep.subr.bf16.mxu0 %v5073_v2 }
 0x1fe   :  { %2949 = vmatpush3.bf16.msra.mxu1 %v4483_v5 }
 0x1ff   :  { %2950 = vmatprep.subr.bf16.mxu1 %v4489_v7 }
 0x200   :  { %3321 = vmatpush3.bf16.msra.mxu0 %v4571_v22 }
 0x201   :  { %3322 = vmatprep.subr.bf16.mxu0 %v5073_v2 }
 0x202   :  { %2951 = vmatpush3.bf16.msra.mxu1 %v4581_v23 }
 0x203   :  { %3350 = vmatprep.subr.bf16.mxu1 %v5073_v2 }
 0x204   :  { %3323 = vmatpush3.bf16.msra.mxu0 %v4591_v1 }
 0x205   :  { %3324 = vmatprep.subr.bf16.mxu0 %v5073_v2  ;;  %1599 = vmatmul.mubr.bf16.vlgmr.msra.gmra.mrb[36].mxu1 %v3670_v28 }
 0x206   :  { %3351 = vmatpush3.bf16.msra.mxu1 %v4125_v38  ;;  %3366 = vmatprep.mubr.msk.bf16.mxu1 %vm3755_vm0, %v5073_v2  ;;  %v3673_v38 = vld [vmem:[%s5049_s0 + $0xb0] ss:$12 sps:$4 sm:$0x3f]  }
 0x207   :  { %3352 = vmatprep.subr.bf16.mxu1 %v5073_v2 }
 0x208   :  { %3325 = vmatpush3.bf16.msra.mxu0 %v4603_v59 }
 0x209   :  { %3330 = vmatprep.subr.bf16.mxu0 %v5073_v2 }
 0x20a   :  { %3353 = vmatpush3.bf16.msra.mxu1 %v4137_v40 }
 0x20b   :  { %3327 = vmatmul.mubr.bf16.vlgmr.msra.gmra.mrb[36].mxu0 %v3669_v30  ;;  %3354 = vmatprep.subr.bf16.mxu1 %v5073_v2 }
 0x20c   :  { %3331 = vmatpush3.bf16.msra.mxu0 %v4524_v26  ;;  %3346 = vmatprep.mubr.msk.bf16.mxu0 %vm3755_vm0, %v5073_v2 }
 0x20d   :  { %3332 = vmatprep.subr.bf16.mxu0 %v5073_v2 }
 0x20e   :  { %3355 = vmatpush3.bf16.msra.mxu1 %v4151_v42 }
 0x20f   :  { %3356 = vmatprep.subr.bf16.mxu1 %v5073_v2 }
 0x210   :  { %3333 = vmatpush3.bf16.msra.mxu0 %v4535_v4 }
 0x211   :  { %3334 = vmatprep.subr.bf16.mxu0 %v5073_v2 }
 0x212   :  { %3357 = vmatpush3.bf16.msra.mxu1 %v4175_v45 }
 0x213   :  { %3358 = vmatprep.subr.bf16.mxu1 %v5073_v2 }
 0x214   :  { %3335 = vmatpush3.bf16.msra.mxu0 %v4544_v27 }
 0x215   :  { %3336 = vmatprep.subr.bf16.mxu0 %v5073_v2 }
 0x216   :  { %3359 = vmatpush3.bf16.msra.mxu1 %v4189_v47 }
 0x217   :  { %3360 = vmatprep.subr.bf16.mxu1 %v5073_v2 }
 0x218   :  { %3337 = vmatpush3.bf16.msra.mxu0 %v4553_v33 }
 0x219   :  { %3338 = vmatprep.subr.bf16.mxu0 %v5073_v2 }
 0x21a   :  { %3361 = vmatpush3.bf16.msra.mxu1 %v4203_v49 }
 0x21b   :  { %3362 = vmatprep.subr.bf16.mxu1 %v5073_v2 }
 0x21c   :  { %3339 = vmatpush3.bf16.msra.mxu0 %v4562_v10 }
 0x21d   :  { %3340 = vmatprep.subr.bf16.mxu0 %v5073_v2 }
 0x21e   :  { %3363 = vmatpush3.bf16.msra.mxu1 %v4217_v51 }
 0x21f   :  { %3364 = vmatprep.subr.bf16.mxu1 %v5073_v2 }
 0x220   :  { %3341 = vmatpush3.bf16.msra.mxu0 %v4571_v22 }
 0x221   :  { %3342 = vmatprep.subr.bf16.mxu0 %v5073_v2 }
 0x222   :  { %3365 = vmatpush3.bf16.msra.mxu1 %v4225_v52 }
 0x223   :  { %3390 = vmatprep.subr.bf16.mxu1 %v5073_v2 }
 0x224   :  { %3343 = vmatpush3.bf16.msra.mxu0 %v4591_v1 }
 0x225   :  { %3344 = vmatprep.subr.bf16.mxu0 %v5073_v2 }
 0x228   :  { %3345 = vmatpush3.bf16.msra.mxu0 %v4603_v59 }
 0x229   :  { %3370 = vmatprep.subr.bf16.mxu0 %v5073_v2 }
 0x22b   :  { %3347 = vmatmul.mubr.bf16.vlgmr.msra.gmra.mrb[40].mxu0 %v3673_v38 }
 0x22c   :  { %3371 = vmatpush3.bf16.msra.mxu0 %v4120_v37  ;;  %3386 = vmatprep.mubr.msk.bf16.mxu0 %vm3755_vm0, %v5073_v2 }
 0x22d   :  { %3372 = vmatprep.subr.bf16.mxu0 %v5073_v2 }
 0x230   :  { %3373 = vmatpush3.bf16.msra.mxu0 %v4131_v39 }
 0x231   :  { %3374 = vmatprep.subr.bf16.mxu0 %v5073_v2 }
 0x234   :  { %3375 = vmatpush3.bf16.msra.mxu0 %v4145_v41 }
 0x235   :  { %3376 = vmatprep.subr.bf16.mxu0 %v5073_v2 }
 0x238   :  { %v873_v1 = vpop.f32.mrb[16].mxu1  ;;  %3377 = vmatpush3.bf16.msra.mxu0 %v4159_v43 }
 0x239   :  { %v3208_v40 = vpop.f32.mrb[17].mxu1  ;;  %3378 = vmatprep.subr.bf16.mxu0 %v5073_v2 }
 0x23a   :  { %v876_v37 = vpop.f32.mrb[18].mxu1 }
 0x23b   :  { %v3209_v42 = vpop.f32.mrb[19].mxu1 }
 0x23c   :  { %3379 = vmatpush3.bf16.msra.mxu0 %v4169_v44 }
 0x23d   :  { %3380 = vmatprep.subr.bf16.mxu0 %v5073_v2 }
 0x23e   :  { %v785_v45 = vpop.f32.mrb[16].mxu0 }
 0x23f   :  { %v874_v39 = vadd.f32 %v873_v1, %v785_v45  ;;  %v3188_v47 = vpop.f32.mrb[17].mxu0 }
 0x240   :  { %v788_v49 = vpop.f32.mrb[18].mxu0  ;;  %3381 = vmatpush3.bf16.msra.mxu0 %v4182_v46 }
 0x241   :  { %v3189_v41 = vpop.f32.mrb[19].mxu0  ;;  %3382 = vmatprep.subr.bf16.mxu0 %v5073_v2 }
 0x244   :  { %3383 = vmatpush3.bf16.msra.mxu0 %v4196_v48 }
 0x245   :  { %3384 = vmatprep.subr.bf16.mxu0 %v5073_v2 }
 0x248   :  { %3385 = vmatpush3.bf16.msra.mxu0 %v4210_v50 }
 0x249   :  { %3410 = vmatprep.subr.bf16.mxu0 %v5073_v2 }
 0x258   :  { %v1091_v43 = vpop.f32.mrb[20].mxu1 }
 0x259   :  { %v3248_v44 = vpop.f32.mrb[21].mxu1 }
 0x25a   :  { %v1094_v51 = vpop.f32.mrb[22].mxu1 }
 0x25b   :  { %v3249_v52 = vpop.f32.mrb[23].mxu1 }
 0x25e   :  { %v981_v31 = vpop.f32.mrb[20].mxu0 }
 0x25f   :  { %v987_v34 = vadd.f32 %v981_v31, %v874_v39  ;;  %v3228_v35 = vpop.f32.mrb[21].mxu0 }
 0x260   :  { %v984_v53 = vpop.f32.mrb[22].mxu0 }
 0x261   :  { %v3229_v46 = vpop.f32.mrb[23].mxu0  ;;  %v1097_v54 = vadd.f32 %v1091_v43, %v987_v34 }
 0x278   :  { %v2859_v56 = vpop.f32.mrb[24].mxu1 }
 0x279   :  { %v2860_v57 = vpop.f32.mrb[25].mxu1 }
 0x27a   :  { %v2861_v59 = vadd.f32 %v2860_v57, %v2859_v56  ;;  %v2862_v48 = vpop.f32.mrb[26].mxu1 }
 0x27b   :  { %v2863_v60 = vpop.f32.mrb[27].mxu1 }
 0x27c   :  { %v2864_v61 = vadd.f32 %v2863_v60, %v2862_v48 }
 0x27e   :  { %v1199_v63 = vpop.f32.mrb[24].mxu0 }
 0x27f   :  { %v4745_v50 = vadd.f32 %v1199_v63, %v1097_v54  ;;  %v3268_v0 = vpop.f32.mrb[25].mxu0 }
 0x280   :  { %v1202_v5 = vpop.f32.mrb[26].mxu0 }
 0x281   :  { %v3269_v7 = vpop.f32.mrb[27].mxu0 }
 0x298   :  { %v2890_v23 = vpop.f32.mrb[28].mxu1 }
 0x299   :  { %v2891_v26 = vpop.f32.mrb[29].mxu1 }
 0x29a   :  { %v2892_v4 = vadd.f32 %v2891_v26, %v2890_v23  ;;  %v2893_v27 = vpop.f32.mrb[30].mxu1 }
 0x29b   :  { %v2894_v33 = vpop.f32.mrb[31].mxu1 }
 0x29c   :  { %v2895_v10 = vadd.f32 %v2894_v33, %v2893_v27 }
 0x29e   :  { %v1328_v22 = vpop.f32.mrb[28].mxu0 }
 0x29f   :  { %v1329_v62 = vadd.f32 %v2861_v59, %v1328_v22  ;;  %v3288_v8 = vpop.f32.mrb[29].mxu0 }
 0x2a0   :  { %v1331_v24 = vpop.f32.mrb[30].mxu0 }
 0x2a1   :  { %v1332_v28 = vadd.f32 %v2864_v61, %v1331_v24  ;;  %v3289_v30 = vpop.f32.mrb[31].mxu0 }
 0x2b8   :  { %v2921_v38 = vpop.f32.mrb[32].mxu1 }
 0x2b9   :  { %v2922_v1 = vpop.f32.mrb[33].mxu1 }
 0x2ba   :  { %v2923_v40 = vadd.f32 %v2922_v1, %v2921_v38  ;;  %v2924_v37 = vpop.f32.mrb[34].mxu1 }
 0x2bb   :  { %v2925_v42 = vpop.f32.mrb[35].mxu1 }
 0x2bc   :  { %v2926_v45 = vadd.f32 %v2925_v42, %v2924_v37  ;;  %v3684_v37 = vld [vmem:[%s5054_s5 + $0x10] sm:$0xff]  }
 0x2bd   :  { %v3685_v42 = vld [vmem:[%s5054_s5 + $0x90] sm:$0xff]  }
 0x2be   :  { %v1431_v39 = vpop.f32.mrb[32].mxu0 }
 0x2bf   :  { %v1432_v47 = vadd.f32 %v2892_v4, %v1431_v39  ;;  %v3308_v49 = vpop.f32.mrb[33].mxu0  ;;  %v3687_v39 = vld [vmem:[%s5054_s5 + $0xd8] sm:$0xff]  }
 0x2c0   :  { %v1434_v41 = vpop.f32.mrb[34].mxu0  ;;  %v3689_v49 = vld [vmem:[%s5054_s5 + $0x98] sm:$0xff]  }
 0x2c1   :  { %v1438_v43 = vmax.f32 %v1329_v62, %v1432_v47  ;;  %v1435_v44 = vadd.f32 %v2895_v10, %v1434_v41  ;;  %v3309_v51 = vpop.f32.mrb[35].mxu0  ;;  %v3688_v47 = vld [vmem:[%s5054_s5 + $0x18] sm:$0xff]   ;;  %v3690_v41 = vld [vmem:[%s5054_s5 + $0x60] sm:$0xff]  }
 0x2c3   :  { %v1439_v52 = vmax.f32 %v1332_v28, %v1435_v44 }
 0x2d8   :  { %v2952_v31 = vpop.f32.mrb[36].mxu1 }
 0x2d9   :  { %v2953_v34 = vpop.f32.mrb[37].mxu1 }
 0x2da   :  { %v2954_v35 = vadd.f32 %v2953_v34, %v2952_v31  ;;  %v2955_v53 = vpop.f32.mrb[38].mxu1 }
 0x2db   :  { %v2956_v46 = vpop.f32.mrb[39].mxu1 }
 0x2dc   :  { %v2957_v54 = vadd.f32 %v2956_v46, %v2955_v53 }
 0x2de   :  { %v1536_v56 = vpop.f32.mrb[36].mxu0 }
 0x2df   :  { %v1537_v57 = vadd.f32 %v2923_v40, %v1536_v56  ;;  %v3328_v59 = vpop.f32.mrb[37].mxu0 }
 0x2e0   :  { %v1539_v48 = vpop.f32.mrb[38].mxu0 }
 0x2e1   :  { %v1543_v60 = vmax.f32 %v1438_v43, %v1537_v57  ;;  %v1540_v61 = vadd.f32 %v2926_v45, %v1539_v48  ;;  %v3329_v63 = vpop.f32.mrb[39].mxu0  ;;  %v3686_v45 = vld [vmem:[%s5054_s5 + $0x58] sm:$0xff]   ;;  %v3691_v43 = vld [vmem:[%s5054_s5 + $0xe0] sm:$0xff]  }
 0x2e3   :  { %v1544_v0 = vmax.f32 %v1439_v52, %v1540_v61 }
 0x2fe   :  { %v1641_v5 = vpop.f32.mrb[40].mxu0 }
 0x2ff   :  { %v1642_v7 = vadd.f32 %v2954_v35, %v1641_v5  ;;  %v3348_v23 = vpop.f32.mrb[41].mxu0 }
 0x300   :  { %v1644_v26 = vpop.f32.mrb[42].mxu0  ;;  %v3692_v23 = vld [vmem:[%s5054_s5 + $0x20] sm:$0xff]  }
 0x301   :  { %v1648_v4 = vmax.f32 %v1543_v60, %v1642_v7  ;;  %v1645_v27 = vadd.f32 %v2957_v54, %v1644_v26  ;;  %v3349_v33 = vpop.f32.mrb[43].mxu0  ;;  %v3693_v26 = vld [vmem:[%s5054_s5 + $0xa0] sm:$0xff]  }
 0x302   :  { %v2607_v33 = vld [vmem:[%s5053_s4] ss:$0 sm:$0xff] }
 0x303   :  { %v1650_v10 = vadd.f32 %v4232_v58, %v1648_v4  ;;  %v1649_v22 = vmax.f32 %v1544_v0, %v1645_v27  ;;  %v3694_v4 = vld [vmem:[%s5054_s5 + $0x68] sm:$0xff]  }
 0x304   :  { %v3695_v27 = vld [vmem:[%s5054_s5 + $0xe8] sm:$0xff]  }
 0x305   :  { %v1651_v62 = vadd.f32 %v4232_v58, %v1649_v22  ;;  %v1652_v8 = vmax.f32 %v1650_v10, 0.0  ;;  %v3696_v10 = vld [vmem:[%s5054_s5 + $0x28] sm:$0xff]  }
 0x306   :  { %v3697_v22 = vld [vmem:[%s5054_s5 + $0xa8] sm:$0xff]  }
 0x307   :  { %v1653_v24 = vmax.f32 %v1651_v62, 0.0 }
 0x309   :  { %v4749_v28 = vpack.c.bf16 %v1653_v24, %v1652_v8  ;;  %v1212_v8 = vadd.f32 %v2607_v33, %v4745_v50 }
 0x30b   :  { %3387 = vmatmul.mubr.bf16.vlgmr.msra.gmra.mrb[44].mxu0 %v4749_v28  ;;  %v1658_v30 = vshll.u32 %v4749_v28, 16  ;;  %v1656_v38 = vshrl.u32 %v4749_v28, 16 }
 0x30c   :  { %3411 = vmatpush3.bf16.msra.mxu0 %v4239_v3  ;;  %3426 = vmatprep.mubr.msk.bf16.mxu0 %vm3755_vm0, %v5073_v2 }
 0x30d   :  { %3412 = vmatprep.subr.bf16.mxu0 %v5073_v2  ;;  %v1660_v1 = vrot.slane %v1658_v30, 1  ;;  %v1787_v58 = vrot.slane %v1656_v38, 1  ;;  %v1788_v3 = vrot.slane %v1658_v30, 2  ;;  %v3698_v30 = vld [vmem:[%s5054_s5 + $0x70] sm:$0xff]  }
 0x30f   :  { %v1661_v40 = vor.u32 %v1660_v1, %v1656_v38  ;;  %v3699_v38 = vld [vmem:[%s5054_s5 + $0xf0] sm:$0xff]  }
 0x310   :  { %3413 = vmatpush3.bf16.msra.mxu0 %v4249_v6  ;;  %v1789_v6 = vor.u32 %v1788_v3, %v1787_v58  ;;  %v3701_v58 = vld [vmem:[%s5054_s5 + $0xb0] sm:$0xff]  }
 0x311   :  { %3367 = vmatmul.mubr.bf16.vlgmr.msra.gmra.mrb[40].mxu1 %v1661_v40  ;;  %3414 = vmatprep.subr.bf16.mxu0 %v5073_v2  ;;  %v3700_v40 = vld [vmem:[%s5054_s5 + $0x30] sm:$0xff]  }
 0x312   :  { %3391 = vmatpush3.bf16.msra.mxu1 %v4258_v9  ;;  %3406 = vmatprep.mubr.msk.bf16.mxu1 %vm3755_vm0, %v5073_v2  ;;  %v1744_v9 = vrot.slane %v4749_v28, 1 }
 0x313   :  { %3392 = vmatprep.subr.bf16.mxu1 %v5073_v2 }
 0x314   :  { %3415 = vmatpush3.bf16.msra.mxu0 %v4264_v11  ;;  %v5074_v11 = vld [vmem:[#allocation5_spill] sm:$0xff] }
 0x315   :  { %3416 = vmatprep.subr.bf16.mxu0 %v5073_v2 }
 0x316   :  { %3393 = vmatpush3.bf16.msra.mxu1 %v4271_v12  ;;  %v5075_v12 = vld [vmem:[#allocation6_spill] sm:$0xff] }
 0x317   :  { %3394 = vmatprep.subr.bf16.mxu1 %v5073_v2 }
 0x318   :  { %3417 = vmatpush3.bf16.msra.mxu0 %v4280_v13  ;;  %v5076_v13 = vld [vmem:[#allocation7_spill] sm:$0xff] }
 0x319   :  { %3418 = vmatprep.subr.bf16.mxu0 %v5073_v2 }
 0x31a   :  { %3395 = vmatpush3.bf16.msra.mxu1 %v4287_v14  ;;  %v5077_v14 = vld [vmem:[#allocation8_spill] sm:$0xff] }
 0x31b   :  { %3396 = vmatprep.subr.bf16.mxu1 %v5073_v2 }
 0x31c   :  { %3419 = vmatpush3.bf16.msra.mxu0 %v4294_v15  ;;  %v5078_v15 = vld [vmem:[#allocation9_spill] sm:$0xff] }
 0x31d   :  { %3420 = vmatprep.subr.bf16.mxu0 %v5073_v2 }
 0x31e   :  { %3397 = vmatpush3.bf16.msra.mxu1 %v4301_v16  ;;  %v1832_v16 = vrot.slane %v4749_v28, 2 }
 0x31f   :  { %3398 = vmatprep.subr.bf16.mxu1 %v5073_v2 }
 0x320   :  { %3421 = vmatpush3.bf16.msra.mxu0 %v4308_v17  ;;  %v3674_v17 = vld [vmem:[%s5054_s5 + $0x40] sm:$0xff]  }
 0x321   :  { %3422 = vmatprep.subr.bf16.mxu0 %v5073_v2 }
 0x322   :  { %3399 = vmatpush3.bf16.msra.mxu1 %v4315_v18  ;;  %v3675_v18 = vld [vmem:[%s5054_s5 + $0xc0] sm:$0xff]  }
 0x323   :  { %3400 = vmatprep.subr.bf16.mxu1 %v5073_v2 }
 0x324   :  { %3423 = vmatpush3.bf16.msra.mxu0 %v4322_v19  ;;  %v3676_v19 = vld [vmem:[%s5054_s5] sm:$0xff]  }
 0x325   :  { %3424 = vmatprep.subr.bf16.mxu0 %v5073_v2 }
 0x326   :  { %3401 = vmatpush3.bf16.msra.mxu1 %v4329_v20  ;;  %v3677_v20 = vld [vmem:[%s5054_s5 + $0x80] sm:$0xff]  }
 0x327   :  { %3402 = vmatprep.subr.bf16.mxu1 %v5073_v2 }
 0x328   :  { %3425 = vmatpush3.bf16.msra.mxu0 %v4336_v21  ;;  %v3678_v21 = vld [vmem:[%s5054_s5 + $0x48] sm:$0xff]  }
 0x329   :  { %3012 = vmatprep.subr.bf16.mxu0 %v3674_v17 }
 0x32a   :  { %3403 = vmatpush3.bf16.msra.mxu1 %v4343_v25  ;;  %v3679_v25 = vld [vmem:[%s5054_s5 + $0xc8] sm:$0xff]  }
 0x32b   :  { %3427 = vmatmul.mubr.bf16.vlgmr.msra.gmra.mrb[48].mxu0 %v1789_v6  ;;  %3404 = vmatprep.subr.bf16.mxu1 %v5073_v2  ;;  %v3702_v6 = vld [vmem:[%s5054_s5 + $0x78] sm:$0xff]  }
 0x32c   :  { %3013 = vmatpush3.bf16.msra.mxu0 %v3676_v19 }
 0x32d   :  { %3014 = vmatprep.subr.bf16.mxu0 %v3678_v21 }
 0x32e   :  { %3405 = vmatpush3.bf16.msra.mxu1 %v4360_v29  ;;  %v3680_v29 = vld [vmem:[%s5054_s5 + $0x8] sm:$0xff]  }
 0x32f   :  { %3430 = vmatprep.subr.bf16.mxu1 %v5073_v2 }
 0x330   :  { %3015 = vmatpush3.bf16.msra.mxu0 %v3680_v29 }
 0x331   :  { %3407 = vmatmul.mubr.bf16.vlgmr.msra.gmra.mrb[44].mxu1 %v1744_v9  ;;  %v3703_v9 = vld [vmem:[%s5054_s5 + $0xf8] sm:$0xff]  }
 0x332   :  { %3431 = vmatpush3.bf16.msra.mxu1 %v4379_v32  ;;  %3446 = vmatprep.mubr.msk.bf16.mxu1 %vm3755_vm0, %v5073_v2  ;;  %v3681_v32 = vld [vmem:[%s5054_s5 + $0x88] sm:$0xff]  }
 0x333   :  { %3432 = vmatprep.subr.bf16.mxu1 %v5073_v2 }
 0x336   :  { %3433 = vmatpush3.bf16.msra.mxu1 %v4399_v36  ;;  %v3682_v36 = vld [vmem:[%s5054_s5 + $0x50] sm:$0xff]  }
 0x337   :  { %3434 = vmatprep.subr.bf16.mxu1 %v5073_v2  ;;  %3016 = vmatprep.subr.bf16.mxu0 %v3682_v36 }
 0x338   :  { %3017 = vmatpush3.bf16.msra.mxu0 %v3684_v37 }
 0x339   :  { %3018 = vmatprep.subr.bf16.mxu0 %v3686_v45  ;;  %v2253_v45 = vld [vmem:[%s5056_s7 + $0x8] sm:$0xff] }
 0x33a   :  { %3435 = vmatpush3.bf16.msra.mxu1 %v4420_v55  ;;  %v3683_v55 = vld [vmem:[%s5054_s5 + $0xd0] sm:$0xff]  }
 0x33b   :  { %3436 = vmatprep.subr.bf16.mxu1 %v5073_v2 }
 0x33c   :  { %3019 = vmatpush3.bf16.msra.mxu0 %v3688_v47 }
 0x33d   :  { %3020 = vmatprep.subr.bf16.mxu0 %v3690_v41 }
 0x33e   :  { %3437 = vmatpush3.bf16.msra.mxu1 %v5074_v11  ;;  %v3704_v11 = vld [vmem:[%s5054_s5 + $0x38] sm:$0xff]  }
 0x33f   :  { %3438 = vmatprep.subr.bf16.mxu1 %v5073_v2 }
 0x340   :  { %3021 = vmatpush3.bf16.msra.mxu0 %v3692_v23 }
 0x341   :  { %3022 = vmatprep.subr.bf16.mxu0 %v3694_v4 }
 0x342   :  { %3439 = vmatpush3.bf16.msra.mxu1 %v5075_v12  ;;  %v3705_v12 = vld [vmem:[%s5054_s5 + $0xb8] sm:$0xff]  }
 0x343   :  { %3440 = vmatprep.subr.bf16.mxu1 %v5073_v2 }
 0x344   :  { %3023 = vmatpush3.bf16.msra.mxu0 %v3696_v10 }
 0x345   :  { %3024 = vmatprep.subr.bf16.mxu0 %v3698_v30 }
 0x346   :  { %3441 = vmatpush3.bf16.msra.mxu1 %v5076_v13  ;;  %v1213_v13 = vmax.f32 %v1212_v8, 0.0 }
 0x347   :  { %3442 = vmatprep.subr.bf16.mxu1 %v5073_v2 }
 0x348   :  { %3025 = vmatpush3.bf16.msra.mxu0 %v3700_v40  ;;  %v2348_v40 = vld [vmem:[%s5058_s9 + $0x10] sm:$0xff] }
 0x349   :  { %3026 = vmatprep.subr.bf16.mxu0 %v3702_v6  ;;  %v2350_v6 = vld [vmem:[%s5058_s9 + $0x20] sm:$0xff] }
 0x34a   :  { %3443 = vmatpush3.bf16.msra.mxu1 %v5077_v14 }
 0x34b   :  { %3444 = vmatprep.subr.bf16.mxu1 %v5073_v2 }
 0x34c   :  { %3027 = vmatpush3.bf16.msra.mxu0 %v3704_v11 }
 0x34e   :  { %3445 = vmatpush3.bf16.msra.mxu1 %v5078_v15 }
 0x34f   :  { %3034 = vmatprep.subr.bf16.mxu1 %v3675_v18 }
 0x351   :  { %3447 = vmatmul.mubr.bf16.vlgmr.msra.gmra.mrb[48].mxu1 %v1832_v16  ;;  %v3757_v16 = vmov 0.0|0.0  }
 0x352   :  { %3035 = vmatpush3.bf16.msra.mxu1 %v3677_v20  ;;  %3520 = vmatprep.subr.bf16.mxu0 %v3757_v16 }
 0x353   :  { %3036 = vmatprep.subr.bf16.mxu1 %v3679_v25 }
 0x356   :  { %3037 = vmatpush3.bf16.msra.mxu1 %v3681_v32 }
 0x357   :  { %3038 = vmatprep.subr.bf16.mxu1 %v3683_v55 }
 0x35a   :  { %3039 = vmatpush3.bf16.msra.mxu1 %v3685_v42  ;;  %v2252_v42 = vld [vmem:[%s5056_s7] sm:$0xff] }
 0x35b   :  { %3040 = vmatprep.subr.bf16.mxu1 %v3687_v39 }
 0x35e   :  { %3041 = vmatpush3.bf16.msra.mxu1 %v3689_v49 }
 0x35f   :  { %3042 = vmatprep.subr.bf16.mxu1 %v3691_v43 }
 0x362   :  { %3043 = vmatpush3.bf16.msra.mxu1 %v3693_v26  ;;  %v2261_v26 = vld [vmem:[%s5056_s7 + $0x48] sm:$0xff] }
 0x363   :  { %3044 = vmatprep.subr.bf16.mxu1 %v3695_v27  ;;  %v2262_v27 = vld [vmem:[%s5056_s7 + $0x50] sm:$0xff] }
 0x366   :  { %3045 = vmatpush3.bf16.msra.mxu1 %v3697_v22  ;;  %v2264_v22 = vld [vmem:[%s5056_s7 + $0x60] sm:$0xff] }
 0x367   :  { %3046 = vmatprep.subr.bf16.mxu1 %v3699_v38  ;;  %v2346_v38 = vld [vmem:[%s5058_s9] sm:$0xff] }
 0x36a   :  { %3047 = vmatpush3.bf16.msra.mxu1 %v3701_v58 }
 0x36b   :  { %3048 = vmatprep.subr.bf16.mxu1 %v3703_v9  ;;  %v2351_v9 = vld [vmem:[%s5058_s9 + $0x28] sm:$0xff] }
 0x36c   :  { %v3551_v11 = vpack.c.bf16 %v2351_v9, %v2350_v6 }
 0x36e   :  { %3049 = vmatpush3.bf16.msra.mxu1 %v3705_v12  ;;  %v2352_v12 = vld [vmem:[%s5058_s9 + $0x30] sm:$0xff] }
 0x36f   :  { %3544 = vmatprep.subr.bf16.mxu1 %v3757_v16 }
 0x3de   :  { %v1737_v44 = vpop.f32.mrb[44].mxu0 }
 0x3df   :  { %v3388_v51 = vpop.f32.mrb[45].mxu0 }
 0x3e0   :  { %v1740_v52 = vpop.f32.mrb[46].mxu0 }
 0x3e1   :  { %v3389_v31 = vpop.f32.mrb[47].mxu0 }
 0x3e4   :  { %v1697_v34 = vpop.f32.mrb[40].mxu1 }
 0x3e5   :  { %v1738_v35 = vadd.f32 %v1737_v44, %v1697_v34  ;;  %v3368_v53 = vpop.f32.mrb[41].mxu1  ;;  %v3521_v34 = vpack.c.bf16 %v2253_v45, %v2252_v42 }
 0x3e6   :  { %v1700_v46 = vpop.f32.mrb[42].mxu1 }
 0x3e7   :  { %v3369_v54 = vpop.f32.mrb[43].mxu1 }
 0x3fe   :  { %v1825_v56 = vpop.f32.mrb[48].mxu0 }
 0x3ff   :  { %v3428_v57 = vpop.f32.mrb[49].mxu0 }
 0x400   :  { %v1828_v59 = vpop.f32.mrb[50].mxu0 }
 0x401   :  { %v3429_v48 = vpop.f32.mrb[51].mxu0  ;;  %v2254_v59 = vld [vmem:[%s5056_s7 + $0x10] sm:$0xff] }
 0x402   :  { %v2255_v48 = vld [vmem:[%s5056_s7 + $0x18] sm:$0xff] }
 0x404   :  { %v1780_v60 = vpop.f32.mrb[44].mxu1 }
 0x405   :  { %v1786_v61 = vadd.f32 %v1780_v60, %v1738_v35  ;;  %v3408_v63 = vpop.f32.mrb[45].mxu1  ;;  %v3524_v60 = vpack.c.bf16 %v2255_v48, %v2254_v59  ;;  %v2673_v59 = vld [vmem:[%s5059_s10] ss:$0 sm:$0xff] }
 0x406   :  { %v1783_v0 = vpop.f32.mrb[46].mxu1  ;;  %v2257_v63 = vld [vmem:[%s5056_s7 + $0x28] sm:$0xff] }
 0x407   :  { %v3409_v5 = vpop.f32.mrb[47].mxu1  ;;  %v1831_v7 = vadd.f32 %v1825_v56, %v1786_v61  ;;  %v2256_v61 = vld [vmem:[%s5056_s7 + $0x20] sm:$0xff] }
 0x408   :  { %v3527_v0 = vpack.c.bf16 %v2257_v63, %v2256_v61  ;;  %v2258_v5 = vld [vmem:[%s5056_s7 + $0x30] sm:$0xff] }
 0x424   :  { %v1868_v62 = vpop.f32.mrb[48].mxu1 }
 0x425   :  { %v1874_v24 = vadd.f32 %v1868_v62, %v1831_v7  ;;  %v3448_v28 = vpop.f32.mrb[49].mxu1  ;;  %v2259_v7 = vld [vmem:[%s5056_s7 + $0x38] sm:$0xff]  ;;  %v2265_v62 = vld [vmem:[%s5056_s7 + $0x68] sm:$0xff] }
 0x426   :  { %v1871_v1 = vpop.f32.mrb[50].mxu1  ;;  %v3530_v23 = vpack.c.bf16 %v2259_v7, %v2258_v5  ;;  %v3539_v8 = vpack.c.bf16 %v2265_v62, %v2264_v22  ;;  %v2267_v28 = vld [vmem:[%s5056_s7 + $0x78] sm:$0xff] }
 0x427   :  { %v1875_v50 = vadd.f32 %v2607_v33, %v1874_v24  ;;  %v3449_v3 = vpop.f32.mrb[51].mxu1  ;;  %v2263_v33 = vld [vmem:[%s5056_s7 + $0x58] sm:$0xff]  ;;  %v2266_v24 = vld [vmem:[%s5056_s7 + $0x70] sm:$0xff]  ;;  %v2347_v1 = vld [vmem:[%s5058_s9 + $0x8] sm:$0xff] }
 0x428   :  { %v3536_v10 = vpack.c.bf16 %v2263_v33, %v2262_v27  ;;  %v3542_v30 = vpack.c.bf16 %v2267_v28, %v2266_v24  ;;  %v3545_v58 = vpack.c.bf16 %v2347_v1, %v2346_v38 }
 0x429   :  { %v1876_v14 = vmax.f32 %v1875_v50, 0.0  ;;  %v2349_v50 = vld [vmem:[%s5058_s9 + $0x18] sm:$0xff] }
 0x42a   :  { %v3548_v3 = vpack.c.bf16 %v2349_v50, %v2348_v40 }
 0x42b   :  { %v3573_v15 = vpack.i.bf16 %v1876_v14, %v1213_v13 }
 0x42d   :  { %3574 = vrot.lane.b32.xlu0 %v3573_v15, %s3756_s21  ;;  %v2354_v15 = vld [vmem:[%s5058_s9 + $0x40] sm:$0xff] }
 0x49f   :  { %v3575_v17 = vpop.permute.xlu0 %3574 }
 0x4a0   :  { %v3577_v18 = vunpack.i.h.bf16 %v3575_v17  ;;  %v3576_v19 = vunpack.i.l.bf16 %v3575_v17  ;;  %v2355_v17 = vld [vmem:[%s5058_s9 + $0x48] sm:$0xff] }
 0x4a2   :  { %v1881_v20 = vsel %vm1218_vm1, %v3577_v18, 0.0  ;;  %v1219_v21 = vsel %vm1218_vm1, %v3576_v19, 0.0  ;;  %v3557_v18 = vpack.c.bf16 %v2355_v17, %v2354_v15  ;;  %v2356_v19 = vld [vmem:[%s5058_s9 + $0x50] sm:$0xff] }
 0x4a3   :  { %v1882_v25 = vmax.f32 %v1876_v14, %v1881_v20  ;;  %v1220_v29 = vmax.f32 %v1213_v13, %v1219_v21  ;;  %v2353_v13 = vld [vmem:[%s5058_s9 + $0x38] sm:$0xff] }
 0x4a4   :  { %v3554_v14 = vpack.c.bf16 %v2353_v13, %v2352_v12  ;;  %v2357_v20 = vld [vmem:[%s5058_s9 + $0x58] sm:$0xff] }
 0x4a5   :  { %v1884_v32 = vrot.slane %v1882_v25, 1  ;;  %v1222_v36 = vrot.slane %v1220_v29, 1  ;;  %v3560_v21 = vpack.c.bf16 %v2357_v20, %v2356_v19 }
 0x4a7   :  { %v1886_v55 = vmax.f32 %v1882_v25, %v1884_v32  ;;  %v1224_v37 = vmax.f32 %v1220_v29, %v1222_v36  ;;  %v2358_v25 = vld [vmem:[%s5058_s9 + $0x60] sm:$0xff]  ;;  %v2359_v29 = vld [vmem:[%s5058_s9 + $0x68] sm:$0xff] }
 0x4a8   :  { %v3563_v32 = vpack.c.bf16 %v2359_v29, %v2358_v25 }
 0x4a9   :  { %v1226_v39 = vrot.slane %v1224_v37, 2  ;;  %v2636_v47 = vrot.slane %v1886_v55, 9  ;;  %v1230_v49 = vrot.slane %v1224_v37, 6  ;;  %v2638_v41 = vrot.slane %v1886_v55, 13 }
 0x4aa   :  { %v1891_v43 = vrot.slane %v1886_v55, 7  ;;  %v1228_v44 = vrot.slane %v1224_v37, 4  ;;  %v2637_v51 = vrot.slane %v1886_v55, 11 }
 0x4ab   :  { %v1901_v52 = vsel %vm1899_vm2, %v1226_v39, %v2636_v47  ;;  %v1903_v31 = vsel %vm1899_vm2, %v1230_v49, %v2638_v41 }
 0x4ac   :  { %v1905_v35 = vpack.c.bf16 %v1901_v52, %v1901_v52  ;;  %v1907_v53 = vpack.c.bf16 %v1903_v31, %v1903_v31  ;;  %v1900_v46 = vsel %vm1899_vm2, %v1224_v37, %v1891_v43  ;;  %v1902_v54 = vsel %vm1899_vm2, %v1228_v44, %v2637_v51  ;;  %v2639_v37 = vld [vmem:[%s5055_s6] ss:$0 sm:$0xff] }
 0x4ad   :  { %v1904_v56 = vpack.c.bf16 %v1900_v46, %v1900_v46  ;;  %v1906_v57 = vpack.c.bf16 %v1902_v54, %v1902_v54 }
 0x4ae   :  { %2203 = vmatprep.mubr.bf16.mxu0 %v1905_v35  ;;  %2243 = vmatprep.mubr.bf16.mxu1 %v1907_v53  ;;  %v2672_v53 = vld [vmem:[%s5057_s8] ss:$0 sm:$0xff] }
 0x4af   :  { %2204 = vmatmul.mubr.bf16.vlgmr.msra.gmra.mrb[52].mxu0 %v1904_v56  ;;  %2244 = vmatmul.mubr.bf16.vlgmr.msra.gmra.mrb[52].mxu1 %v1906_v57 }
 0x4b0   :  { %3522 = vmatpush3.bf16.msra.mxu0 %v3521_v34  ;;  %3482 = vmatprep.mubr.msk.f32.mxu0 %vm3755_vm0, %v5073_v2  ;;  %v2361_v34 = vld [vmem:[%s5058_s9 + $0x78] sm:$0xff] }
 0x4b1   :  { %3523 = vmatprep.subr.bf16.mxu0 %v3757_v16  ;;  %3517 = vmatprep.mubr.msk.f32.mxu1 %vm3755_vm0, %v5073_v2  ;;  %v2260_v2 = vld [vmem:[%s5056_s7 + $0x40] sm:$0xff] }
 0x4b2   :  { %v3533_v4 = vpack.c.bf16 %v2261_v26, %v2260_v2  ;;  %3546 = vmatpush3.bf16.msra.mxu1 %v3545_v58 }
 0x4b3   :  { %3547 = vmatprep.subr.bf16.mxu1 %v3757_v16 }
 0x4b4   :  { %3525 = vmatpush3.bf16.msra.mxu0 %v3524_v60 }
 0x4b5   :  { %3526 = vmatprep.subr.bf16.mxu0 %v3757_v16 }
 0x4b6   :  { %3549 = vmatpush3.bf16.msra.mxu1 %v3548_v3 }
 0x4b7   :  { %3550 = vmatprep.subr.bf16.mxu1 %v3757_v16 }
 0x4b8   :  { %3528 = vmatpush3.bf16.msra.mxu0 %v3527_v0 }
 0x4b9   :  { %3529 = vmatprep.subr.bf16.mxu0 %v3757_v16 }
 0x4ba   :  { %3552 = vmatpush3.bf16.msra.mxu1 %v3551_v11 }
 0x4bb   :  { %3553 = vmatprep.subr.bf16.mxu1 %v3757_v16 }
 0x4bc   :  { %3531 = vmatpush3.bf16.msra.mxu0 %v3530_v23 }
 0x4bd   :  { %3532 = vmatprep.subr.bf16.mxu0 %v3757_v16 }
 0x4be   :  { %3555 = vmatpush3.bf16.msra.mxu1 %v3554_v14 }
 0x4bf   :  { %3556 = vmatprep.subr.bf16.mxu1 %v3757_v16 }
 0x4c0   :  { %3534 = vmatpush3.bf16.msra.mxu0 %v3533_v4 }
 0x4c1   :  { %3535 = vmatprep.subr.bf16.mxu0 %v3757_v16 }
 0x4c2   :  { %3558 = vmatpush3.bf16.msra.mxu1 %v3557_v18 }
 0x4c3   :  { %3559 = vmatprep.subr.bf16.mxu1 %v3757_v16 }
 0x4c4   :  { %3537 = vmatpush3.bf16.msra.mxu0 %v3536_v10 }
 0x4c5   :  { %3538 = vmatprep.subr.bf16.mxu0 %v3757_v16 }
 0x4c6   :  { %3561 = vmatpush3.bf16.msra.mxu1 %v3560_v21 }
 0x4c7   :  { %3562 = vmatprep.subr.bf16.mxu1 %v3757_v16 }
 0x4c8   :  { %3540 = vmatpush3.bf16.msra.mxu0 %v3539_v8 }
 0x4c9   :  { %3541 = vmatprep.subr.bf16.mxu0 %v3757_v16 }
 0x4ca   :  { %3564 = vmatpush3.bf16.msra.mxu1 %v3563_v32 }
 0x4cb   :  { %3565 = vmatprep.subr.bf16.mxu1 %v3757_v16  ;;  %v2360_v16 = vld [vmem:[%s5058_s9 + $0x70] sm:$0xff]  ;;  %s3730_s9 = scalar_lea.vmem %s2447_s15, 32 }
 0x4cc   :  { %3543 = vmatpush3.bf16.msra.mxu0 %v3542_v30  ;;  %v3566_v35 = vpack.c.bf16 %v2361_v34, %v2360_v16  ;;  %p3731_p0 = scmp.ne.s32.totalorder %s2447_s15, %s3730_s9  ;;  %p3736_p2 = scmp.lt.s32.totalorder %s3730_s9, %s3730_s9 }
 0x4ce   :  { %3567 = vmatpush3.bf16.msra.mxu1 %v3566_v35  ;;  %p3737_p3 = por %p3736_p2, %p3735_p1 }
 0x4d0   :  { %p3738_p4 = pnand %p3737_p3, %p3731_p0 }
 0x582   :  { %v3028_v36 = vpop.f32.mrb[52].mxu0  ;;  %v3050_v55 = vpop.f32.mrb[52].mxu1 }
 0x583   :  { %v3029_v42 = vpop.f32.mrb[53].mxu0  ;;  %v3051_v45 = vpop.f32.mrb[53].mxu1 }
 0x584   :  { %v3030_v39 = vadd.f32 %v3029_v42, %v3028_v36  ;;  %v3052_v47 = vadd.f32 %v3051_v45, %v3050_v55  ;;  %v3031_v49 = vpop.f32.mrb[54].mxu0  ;;  %v3053_v41 = vpop.f32.mrb[54].mxu1 }
 0x585   :  { %v3032_v43 = vpop.f32.mrb[55].mxu0  ;;  %v3054_v44 = vpop.f32.mrb[55].mxu1 }
 0x586   :  { %v2206_v51 = vadd.f32 %v3030_v39, %v2639_v37 }
 0x588   :  { %v2246_v52 = vadd.f32 %v3052_v47, %v2206_v51 }
 0x58a   :  { %v2251_v31 = vmax.f32 %v2246_v52, 0.0 }
 0x58c   :  { %3483 = vmatmul.mubr.f32.vlgmr.msra.gmra.mrb[56].mxu0 %v2251_v31 }
 0x65f   :  { %v2341_v46 = vpop.f32.mrb[56].mxu0 }
 0x660   :  { %v2342_v54 = vadd.f32 %v2672_v53, %v2341_v46  ;;  %v3484_v56 = vpop.f32.mrb[57].mxu0 }
 0x662   :  { %v2345_v57 = vmax.f32 %v2342_v54, 0.0 }
 0x664   :  { %3518 = vmatmul.mubr.f32.vlgmr.msra.gmra.mrb[56].mxu1 %v2345_v57 }
 0x737   :  { %v2435_v48 = vpop.f32.mrb[56].mxu1 }
 0x738   :  { %v2436_v60 = vadd.f32 %v2673_v59, %v2435_v48  ;;  %v3519_v61 = vpop.f32.mrb[57].mxu1 }
 0x73a   :  { %2439 = vst [vmem:[#allocation2] sm:$0x3] %v2436_v60 }
 0x73b   :  { %3741 = shalt.err (!%p3738_p4)
}
 0x73c   :  { %s3742_s17 = scalar_lea.hbm %s5060_s11, 32 }
 0x73d   :  { %p3743_p5 = scmp.ne.s32.totalorder %s5060_s11, %s3742_s17  ;;  %p3746_p6 = scmp.lt.u32.totalorder %s3742_s17, %s5060_s11 }
 0x73f   :  { %p3748_p7 = pnand %p3746_p6, %p3743_p5 }
 0x741   :  { %3751 = shalt.err (!%p3748_p7)
}
 0x742   :  { %2449 = dma.vmem_to_hbm [thread:$0]  %s2447_s15, 32, %s5060_s11, [#allocation3]  }
 0x743   :  { %3752 = dma.done.wait [#allocation3], 32  }
 0x744   :  { %3753 = vsyncadd [#allocation3], 4294967264 }
 0x745   :  { %2453 = vsyncpa [#allocation3], 1 }

</bundles_post_ra>
